<compile_context>
chip_gen: v7x
topology: tpu7x:2x2x1
jax: 0.10.0
libtpu: 0.0.40
codegen_flags: <defaults>
</compile_context>

<pallas_src>
import jax
import jax.numpy as jnp
import numpy as np
from jax.experimental import pallas as pl
from jax.experimental.pallas import tpu as pltpu

EPS = 1e-5          # nn.BatchNorm1d default

# Logical sizes.
D_IN = 200          # features per bottom-model input (a and b)
D_H1 = 400          # fc1 output
D_H2 = 200          # fc2 / fc3 output
D_OUT = 200

# Lane-padded sizes.
H1P = 512           # 400 -> 512
H2P = 256           # 200 -> 256

# Rows of the packed parameter slab (16, 512).
ROW_G0A, ROW_B0A, ROW_G0B, ROW_B0B = 0, 1, 2, 3
ROW_BIAS1, ROW_G1, ROW_B1 = 4, 5, 6
ROW_BIAS2, ROW_G2, ROW_B2 = 7, 8, 9
ROW_BIAS3 = 10
SLAB_ROWS = 16      # pad to a sublane multiple

_N_KERNEL_INPUTS = 7


# ----------------------------- Pallas kernel -------------------------------

def _top_mlp_kernel(a_ref, b_ref, w1a_ref, w1b_ref, w2_ref, w3_ref, vec_ref,
                    o_ref):
    """Fused [BN0+ReLU]->fc1->[BN1+ReLU]->fc2->[BN2+ReLU]->fc3->log_softmax."""
    f32 = jnp.float32
    bf16 = jnp.bfloat16

    def vrow(row, n):
        # Static (1, n) view of one packed parameter row.
        return vec_ref[row:row + 1, 0:n]

    def bn_relu(x, g, beta):
        # Training-mode BatchNorm1d: biased batch stats over the batch axis,
        # one pass; variance clamped >= 0 against f32 cancellation.
        m = jnp.mean(x, axis=0, keepdims=True)
        msq = jnp.mean(x * x, axis=0, keepdims=True)
        var = jnp.maximum(msq - m * m, 0.0)
        y = (x - m) * jax.lax.rsqrt(var + EPS) * g + beta
        return jnp.maximum(y, 0.0)

    def mm(x, w_ref):
        # bf16 operands, f32 accumulation on the MXU.
        return jnp.dot(x.astype(bf16), w_ref[...], preferred_element_type=f32)

    a = a_ref[...].astype(f32)                    # (N, 200)
    b = b_ref[...].astype(f32)                    # (N, 200)

    # BN0 + ReLU on each half (BatchNorm1d is per-feature, so this is exactly
    # BN over the concatenation), then fc1 as a split matmul — the torch.cat
    # is eliminated entirely.
    ha = bn_relu(a, vrow(ROW_G0A, D_IN), vrow(ROW_B0A, D_IN))
    hb = bn_relu(b, vrow(ROW_G0B, D_IN), vrow(ROW_B0B, D_IN))
    y1 = mm(ha, w1a_ref) + mm(hb, w1b_ref) + vrow(ROW_BIAS1, H1P)   # (N, 512)

    h1 = bn_relu(y1, vrow(ROW_G1, H1P), vrow(ROW_B1, H1P))
    y2 = mm(h1, w2_ref) + vrow(ROW_BIAS2, H2P)                      # (N, 256)

    h2 = bn_relu(y2, vrow(ROW_G2, H2P), vrow(ROW_B2, H2P))
    y3 = mm(h2, w3_ref) + vrow(ROW_BIAS3, H2P)                      # (N, 256)

    # log_softmax over the 200 valid columns; padded columns are excluded
    # from the max/sum by masking them to a huge negative value.
    col = jax.lax.broadcasted_iota(jnp.int32, y3.shape, 1)
    y3m = jnp.where(col < D_OUT, y3, f32(-1e30))
    mx = jnp.max(y3m, axis=1, keepdims=True)
    z = y3m - mx
    lse = jnp.log(jnp.sum(jnp.exp(z), axis=1, keepdims=True))
    o_ref[...] = (z - lse)[:, :D_OUT]


# ------------------------- one-time parameter prep --------------------------

def prepare_params(params):
    """One-time preprocessing (NOT on the per-call path): split/pad/cast the
    weight matrices to bf16 lane-dense slabs and pack all gamma/beta/bias
    vectors into a single padded f32 slab."""
    f32, bf = jnp.float32, jnp.bfloat16

    w1, b1 = params["fc1"]          # (400, 400), (400,)   [stored (in, out)]
    w2, b2 = params["fc2"]          # (400, 200), (200,)
    w3, b3 = params["fc3"]          # (200, 200), (200,)
    g0, be0 = params["bn0"]         # (400,), (400,)
    g1, be1 = params["bn1"]         # (400,), (400,)
    g2, be2 = params["bn2"]         # (200,), (200,)

    def pad2(w, rows, cols):
        out = jnp.zeros((rows, cols), f32)
        return out.at[:w.shape[0], :w.shape[1]].set(w.astype(f32))

    w1a = pad2(w1[:D_IN], D_IN, H1P).astype(bf)    # (200, 512)
    w1b = pad2(w1[D_IN:], D_IN, H1P).astype(bf)    # (200, 512)
    w2p = pad2(w2, H1P, H2P).astype(bf)            # (512, 256)
    w3p = pad2(w3, H2P, H2P).astype(bf)            # (256, 256)

    slab = jnp.zeros((SLAB_ROWS, H1P), f32)

    def put(s, row, v):
        return s.at[row, :v.shape[0]].set(v.astype(f32))

    slab = put(slab, ROW_G0A, g0[:D_IN])
    slab = put(slab, ROW_B0A, be0[:D_IN])
    slab = put(slab, ROW_G0B, g0[D_IN:])
    slab = put(slab, ROW_B0B, be0[D_IN:])
    slab = put(slab, ROW_BIAS1, b1)
    slab = put(slab, ROW_G1, g1)
    slab = put(slab, ROW_B1, be1)
    slab = put(slab, ROW_BIAS2, b2)
    slab = put(slab, ROW_G2, g2)
    slab = put(slab, ROW_B2, be2)
    slab = put(slab, ROW_BIAS3, b3)

    return {"w1a": w1a, "w1b": w1b, "w2": w2p, "w3": w3p, "vec": slab}


# ------------------------------ jitted forward ------------------------------

@jax.jit
def top_model_forward(prepared, a, b):
    """a, b: (N, 200) f32 — the two bottom-model outputs. `prepared` is the
    output of prepare_params (no per-call parameter processing)."""
    n = a.shape[0]
    vmem = pl.BlockSpec(memory_space=pltpu.MemorySpace.VMEM)
    return pl.pallas_call(
        _top_mlp_kernel,
        out_shape=jax.ShapeDtypeStruct((n, D_OUT), jnp.float32),
        in_specs=[vmem] * _N_KERNEL_INPUTS,
        out_specs=vmem,
        compiler_params=pltpu.CompilerParams(vmem_limit_bytes=32 << 20),
    )(a, b, prepared["w1a"], prepared["w1b"], prepared["w2"], prepared["w3"],
      prepared["vec"])


# ----------------------------- parameter init ------------------------------

def init_params(key):
    """Matches the PyTorch module: kaiming_normal_ Linear weights (fan_in),
    default uniform Linear biases, BatchNorm gamma=1 / beta=0.
    Linear weights are stored transposed (in, out) for x @ W."""
    ks = jax.random.split(key, 6)

    def kaiming(k, fan_in, fan_out):
        return jax.random.normal(k, (fan_in, fan_out), jnp.float32) * np.sqrt(2.0 / fan_in)

    def lin_bias(k, fan_in, n):
        bound = 1.0 / np.sqrt(fan_in)
        return jax.random.uniform(k, (n,), jnp.float32, -bound, bound)

    return {
        "fc1": (kaiming(ks[0], 400, 400), lin_bias(ks[1], 400, 400)),
        "fc2": (kaiming(ks[2], 400, 200), lin_bias(ks[3], 400, 200)),
        "fc3": (kaiming(ks[4], 200, 200), lin_bias(ks[5], 200, 200)),
        "bn0": (jnp.ones(400, jnp.float32), jnp.zeros(400, jnp.float32)),
        "bn1": (jnp.ones(400, jnp.float32), jnp.zeros(400, jnp.float32)),
        "bn2": (jnp.ones(200, jnp.float32), jnp.zeros(200, jnp.float32)),
    }


# --------------------------------- main -------------------------------------

if __name__ == "__main__":
    key = jax.random.PRNGKey(0)
    pkey, akey, bkey = jax.random.split(key, 3)

    params = init_params(pkey)
    prepared = prepare_params(params)          # one-time; off the hot path
    jax.block_until_ready(prepared)

    # Two bottom-model outputs, each (batch=2, 200) -> concat gives 400 features.
    a = jax.random.normal(akey, (2, 200), jnp.float32)
    b = jax.random.normal(bkey, (2, 200), jnp.float32)

    out = top_model_forward(prepared, a, b)
    jax.block_until_ready(out)

    assert out.shape == (2, 200) and out.dtype == jnp.float32
    # log_softmax rows must exponentiate-sum to ~1.
    row_sums = jnp.exp(out).sum(axis=1)
    assert bool(jnp.all(jnp.abs(row_sums - 1.0) < 1e-3))
    assert bool(jnp.all(jnp.isfinite(out)))
    print("KERNEL_OK")
</pallas_src>

<mosaic_0001>
module attributes {stable_mosaic.version = 11 : i64} {
  func.func @_top_mlp_kernel(%arg0: memref<2x200xf32, #tpu.memory_space<vmem>>, %arg1: memref<2x200xf32, #tpu.memory_space<vmem>>, %arg2: memref<200x512xbf16, #tpu.memory_space<vmem>>, %arg3: memref<200x512xbf16, #tpu.memory_space<vmem>>, %arg4: memref<512x256xbf16, #tpu.memory_space<vmem>>, %arg5: memref<256x256xbf16, #tpu.memory_space<vmem>>, %arg6: memref<16x512xf32, #tpu.memory_space<vmem>>, %arg7: memref<2x200xf32, #tpu.memory_space<vmem>>) attributes {dimension_semantics = [], scalar_prefetch = 0 : i64, scratch_operands = 0 : i64, tpu.core_type = #tpu.core_type<tc>} {
    %c0 = arith.constant 0 : index
    %c0_0 = arith.constant 0 : index
    %0 = vector.load %arg0[%c0, %c0_0] : memref<2x200xf32, #tpu.memory_space<vmem>>, vector<2x200xf32>
    %c0_1 = arith.constant 0 : index
    %c0_2 = arith.constant 0 : index
    %1 = vector.load %arg1[%c0_1, %c0_2] : memref<2x200xf32, #tpu.memory_space<vmem>>, vector<2x200xf32>
    %c0_3 = arith.constant 0 : index
    %c0_4 = arith.constant 0 : index
    %2 = vector.load %arg6[%c0_3, %c0_4] : memref<16x512xf32, #tpu.memory_space<vmem>>, vector<1x200xf32>
    %c1 = arith.constant 1 : index
    %c0_5 = arith.constant 0 : index
    %3 = vector.load %arg6[%c1, %c0_5] : memref<16x512xf32, #tpu.memory_space<vmem>>, vector<1x200xf32>
    %cst = arith.constant dense<0.000000e+00> : vector<200xf32>
    %4 = vector.multi_reduction <add>, %0, %cst [0] : vector<2x200xf32> to vector<200xf32>
    %5 = vector.shape_cast %4 : vector<200xf32> to vector<1x200xf32>
    %cst_6 = arith.constant 2.000000e+00 : f32
    %6 = vector.broadcast %cst_6 : f32 to vector<1x200xf32>
    %7 = arith.divf %5, %6 : vector<1x200xf32>
    %8 = arith.mulf %0, %0 : vector<2x200xf32>
    %cst_7 = arith.constant dense<0.000000e+00> : vector<200xf32>
    %9 = vector.multi_reduction <add>, %8, %cst_7 [0] : vector<2x200xf32> to vector<200xf32>
    %10 = vector.shape_cast %9 : vector<200xf32> to vector<1x200xf32>
    %cst_8 = arith.constant 2.000000e+00 : f32
    %11 = vector.broadcast %cst_8 : f32 to vector<1x200xf32>
    %12 = arith.divf %10, %11 : vector<1x200xf32>
    %13 = arith.mulf %7, %7 : vector<1x200xf32>
    %14 = arith.subf %12, %13 : vector<1x200xf32>
    %cst_9 = arith.constant 0.000000e+00 : f32
    %15 = vector.broadcast %cst_9 : f32 to vector<1x200xf32>
    %16 = arith.maximumf %14, %15 : vector<1x200xf32>
    %17 = vector.broadcast %7 : vector<1x200xf32> to vector<2x200xf32>
    %18 = arith.subf %0, %17 : vector<2x200xf32>
    %cst_10 = arith.constant 9.99999974E-6 : f32
    %19 = vector.broadcast %cst_10 : f32 to vector<1x200xf32>
    %20 = arith.addf %16, %19 : vector<1x200xf32>
    %21 = math.rsqrt %20 : vector<1x200xf32>
    %22 = vector.broadcast %21 : vector<1x200xf32> to vector<2x200xf32>
    %23 = arith.mulf %18, %22 : vector<2x200xf32>
    %24 = vector.broadcast %2 : vector<1x200xf32> to vector<2x200xf32>
    %25 = arith.mulf %23, %24 : vector<2x200xf32>
    %26 = vector.broadcast %3 : vector<1x200xf32> to vector<2x200xf32>
    %27 = arith.addf %25, %26 : vector<2x200xf32>
    %cst_11 = arith.constant 0.000000e+00 : f32
    %28 = vector.broadcast %cst_11 : f32 to vector<2x200xf32>
    %29 = arith.maximumf %27, %28 : vector<2x200xf32>
    %c2 = arith.constant 2 : index
    %c0_12 = arith.constant 0 : index
    %30 = vector.load %arg6[%c2, %c0_12] : memref<16x512xf32, #tpu.memory_space<vmem>>, vector<1x200xf32>
    %c3 = arith.constant 3 : index
    %c0_13 = arith.constant 0 : index
    %31 = vector.load %arg6[%c3, %c0_13] : memref<16x512xf32, #tpu.memory_space<vmem>>, vector<1x200xf32>
    %cst_14 = arith.constant dense<0.000000e+00> : vector<200xf32>
    %32 = vector.multi_reduction <add>, %1, %cst_14 [0] : vector<2x200xf32> to vector<200xf32>
    %33 = vector.shape_cast %32 : vector<200xf32> to vector<1x200xf32>
    %cst_15 = arith.constant 2.000000e+00 : f32
    %34 = vector.broadcast %cst_15 : f32 to vector<1x200xf32>
    %35 = arith.divf %33, %34 : vector<1x200xf32>
    %36 = arith.mulf %1, %1 : vector<2x200xf32>
    %cst_16 = arith.constant dense<0.000000e+00> : vector<200xf32>
    %37 = vector.multi_reduction <add>, %36, %cst_16 [0] : vector<2x200xf32> to vector<200xf32>
    %38 = vector.shape_cast %37 : vector<200xf32> to vector<1x200xf32>
    %cst_17 = arith.constant 2.000000e+00 : f32
    %39 = vector.broadcast %cst_17 : f32 to vector<1x200xf32>
    %40 = arith.divf %38, %39 : vector<1x200xf32>
    %41 = arith.mulf %35, %35 : vector<1x200xf32>
    %42 = arith.subf %40, %41 : vector<1x200xf32>
    %cst_18 = arith.constant 0.000000e+00 : f32
    %43 = vector.broadcast %cst_18 : f32 to vector<1x200xf32>
    %44 = arith.maximumf %42, %43 : vector<1x200xf32>
    %45 = vector.broadcast %35 : vector<1x200xf32> to vector<2x200xf32>
    %46 = arith.subf %1, %45 : vector<2x200xf32>
    %cst_19 = arith.constant 9.99999974E-6 : f32
    %47 = vector.broadcast %cst_19 : f32 to vector<1x200xf32>
    %48 = arith.addf %44, %47 : vector<1x200xf32>
    %49 = math.rsqrt %48 : vector<1x200xf32>
    %50 = vector.broadcast %49 : vector<1x200xf32> to vector<2x200xf32>
    %51 = arith.mulf %46, %50 : vector<2x200xf32>
    %52 = vector.broadcast %30 : vector<1x200xf32> to vector<2x200xf32>
    %53 = arith.mulf %51, %52 : vector<2x200xf32>
    %54 = vector.broadcast %31 : vector<1x200xf32> to vector<2x200xf32>
    %55 = arith.addf %53, %54 : vector<2x200xf32>
    %cst_20 = arith.constant 0.000000e+00 : f32
    %56 = vector.broadcast %cst_20 : f32 to vector<2x200xf32>
    %57 = arith.maximumf %55, %56 : vector<2x200xf32>
    %58 = arith.truncf %29 : vector<2x200xf32> to vector<2x200xbf16>
    %c0_21 = arith.constant 0 : index
    %c0_22 = arith.constant 0 : index
    %59 = vector.load %arg2[%c0_21, %c0_22] : memref<200x512xbf16, #tpu.memory_space<vmem>>, vector<200x512xbf16>
    %cst_23 = arith.constant dense<0.000000e+00> : vector<2x512xf32>
    %60 = tpu.matmul %58, %59, %cst_23 {dimension_numbers = #tpu.dot_dimension_numbers<[1], [0], [0], [1], [0, 0, 1, 1], [], []>} : vector<2x200xbf16>, vector<200x512xbf16>, vector<2x512xf32> -> vector<2x512xf32>
    %61 = arith.truncf %57 : vector<2x200xf32> to vector<2x200xbf16>
    %c0_24 = arith.constant 0 : index
    %c0_25 = arith.constant 0 : index
    %62 = vector.load %arg3[%c0_24, %c0_25] : memref<200x512xbf16, #tpu.memory_space<vmem>>, vector<200x512xbf16>
    %cst_26 = arith.constant dense<0.000000e+00> : vector<2x512xf32>
    %63 = tpu.matmul %61, %62, %cst_26 {dimension_numbers = #tpu.dot_dimension_numbers<[1], [0], [0], [1], [0, 0, 1, 1], [], []>} : vector<2x200xbf16>, vector<200x512xbf16>, vector<2x512xf32> -> vector<2x512xf32>
    %64 = arith.addf %60, %63 : vector<2x512xf32>
    %c4 = arith.constant 4 : index
    %c0_27 = arith.constant 0 : index
    %65 = vector.load %arg6[%c4, %c0_27] : memref<16x512xf32, #tpu.memory_space<vmem>>, vector<1x512xf32>
    %66 = vector.broadcast %65 : vector<1x512xf32> to vector<2x512xf32>
    %67 = arith.addf %64, %66 : vector<2x512xf32>
    %c5 = arith.constant 5 : index
    %c0_28 = arith.constant 0 : index
    %68 = vector.load %arg6[%c5, %c0_28] : memref<16x512xf32, #tpu.memory_space<vmem>>, vector<1x512xf32>
    %c6 = arith.constant 6 : index
    %c0_29 = arith.constant 0 : index
    %69 = vector.load %arg6[%c6, %c0_29] : memref<16x512xf32, #tpu.memory_space<vmem>>, vector<1x512xf32>
    %cst_30 = arith.constant dense<0.000000e+00> : vector<512xf32>
    %70 = vector.multi_reduction <add>, %67, %cst_30 [0] : vector<2x512xf32> to vector<512xf32>
    %71 = vector.shape_cast %70 : vector<512xf32> to vector<1x512xf32>
    %cst_31 = arith.constant 2.000000e+00 : f32
    %72 = vector.broadcast %cst_31 : f32 to vector<1x512xf32>
    %73 = arith.divf %71, %72 : vector<1x512xf32>
    %74 = arith.mulf %67, %67 : vector<2x512xf32>
    %cst_32 = arith.constant dense<0.000000e+00> : vector<512xf32>
    %75 = vector.multi_reduction <add>, %74, %cst_32 [0] : vector<2x512xf32> to vector<512xf32>
    %76 = vector.shape_cast %75 : vector<512xf32> to vector<1x512xf32>
    %cst_33 = arith.constant 2.000000e+00 : f32
    %77 = vector.broadcast %cst_33 : f32 to vector<1x512xf32>
    %78 = arith.divf %76, %77 : vector<1x512xf32>
    %79 = arith.mulf %73, %73 : vector<1x512xf32>
    %80 = arith.subf %78, %79 : vector<1x512xf32>
    %cst_34 = arith.constant 0.000000e+00 : f32
    %81 = vector.broadcast %cst_34 : f32 to vector<1x512xf32>
    %82 = arith.maximumf %80, %81 : vector<1x512xf32>
    %83 = vector.broadcast %73 : vector<1x512xf32> to vector<2x512xf32>
    %84 = arith.subf %67, %83 : vector<2x512xf32>
    %cst_35 = arith.constant 9.99999974E-6 : f32
    %85 = vector.broadcast %cst_35 : f32 to vector<1x512xf32>
    %86 = arith.addf %82, %85 : vector<1x512xf32>
    %87 = math.rsqrt %86 : vector<1x512xf32>
    %88 = vector.broadcast %87 : vector<1x512xf32> to vector<2x512xf32>
    %89 = arith.mulf %84, %88 : vector<2x512xf32>
    %90 = vector.broadcast %68 : vector<1x512xf32> to vector<2x512xf32>
    %91 = arith.mulf %89, %90 : vector<2x512xf32>
    %92 = vector.broadcast %69 : vector<1x512xf32> to vector<2x512xf32>
    %93 = arith.addf %91, %92 : vector<2x512xf32>
    %cst_36 = arith.constant 0.000000e+00 : f32
    %94 = vector.broadcast %cst_36 : f32 to vector<2x512xf32>
    %95 = arith.maximumf %93, %94 : vector<2x512xf32>
    %96 = arith.truncf %95 : vector<2x512xf32> to vector<2x512xbf16>
    %c0_37 = arith.constant 0 : index
    %c0_38 = arith.constant 0 : index
    %97 = vector.load %arg4[%c0_37, %c0_38] : memref<512x256xbf16, #tpu.memory_space<vmem>>, vector<512x256xbf16>
    %cst_39 = arith.constant dense<0.000000e+00> : vector<2x256xf32>
    %98 = tpu.matmul %96, %97, %cst_39 {dimension_numbers = #tpu.dot_dimension_numbers<[1], [0], [0], [1], [0, 0, 1, 1], [], []>} : vector<2x512xbf16>, vector<512x256xbf16>, vector<2x256xf32> -> vector<2x256xf32>
    %c7 = arith.constant 7 : index
    %c0_40 = arith.constant 0 : index
    %99 = vector.load %arg6[%c7, %c0_40] : memref<16x512xf32, #tpu.memory_space<vmem>>, vector<1x256xf32>
    %100 = vector.broadcast %99 : vector<1x256xf32> to vector<2x256xf32>
    %101 = arith.addf %98, %100 : vector<2x256xf32>
    %c8 = arith.constant 8 : index
    %c0_41 = arith.constant 0 : index
    %102 = vector.load %arg6[%c8, %c0_41] : memref<16x512xf32, #tpu.memory_space<vmem>>, vector<1x256xf32>
    %c9 = arith.constant 9 : index
    %c0_42 = arith.constant 0 : index
    %103 = vector.load %arg6[%c9, %c0_42] : memref<16x512xf32, #tpu.memory_space<vmem>>, vector<1x256xf32>
    %cst_43 = arith.constant dense<0.000000e+00> : vector<256xf32>
    %104 = vector.multi_reduction <add>, %101, %cst_43 [0] : vector<2x256xf32> to vector<256xf32>
    %105 = vector.shape_cast %104 : vector<256xf32> to vector<1x256xf32>
    %cst_44 = arith.constant 2.000000e+00 : f32
    %106 = vector.broadcast %cst_44 : f32 to vector<1x256xf32>
    %107 = arith.divf %105, %106 : vector<1x256xf32>
    %108 = arith.mulf %101, %101 : vector<2x256xf32>
    %cst_45 = arith.constant dense<0.000000e+00> : vector<256xf32>
    %109 = vector.multi_reduction <add>, %108, %cst_45 [0] : vector<2x256xf32> to vector<256xf32>
    %110 = vector.shape_cast %109 : vector<256xf32> to vector<1x256xf32>
    %cst_46 = arith.constant 2.000000e+00 : f32
    %111 = vector.broadcast %cst_46 : f32 to vector<1x256xf32>
    %112 = arith.divf %110, %111 : vector<1x256xf32>
    %113 = arith.mulf %107, %107 : vector<1x256xf32>
    %114 = arith.subf %112, %113 : vector<1x256xf32>
    %cst_47 = arith.constant 0.000000e+00 : f32
    %115 = vector.broadcast %cst_47 : f32 to vector<1x256xf32>
    %116 = arith.maximumf %114, %115 : vector<1x256xf32>
    %117 = vector.broadcast %107 : vector<1x256xf32> to vector<2x256xf32>
    %118 = arith.subf %101, %117 : vector<2x256xf32>
    %cst_48 = arith.constant 9.99999974E-6 : f32
    %119 = vector.broadcast %cst_48 : f32 to vector<1x256xf32>
    %120 = arith.addf %116, %119 : vector<1x256xf32>
    %121 = math.rsqrt %120 : vector<1x256xf32>
    %122 = vector.broadcast %121 : vector<1x256xf32> to vector<2x256xf32>
    %123 = arith.mulf %118, %122 : vector<2x256xf32>
    %124 = vector.broadcast %102 : vector<1x256xf32> to vector<2x256xf32>
    %125 = arith.mulf %123, %124 : vector<2x256xf32>
    %126 = vector.broadcast %103 : vector<1x256xf32> to vector<2x256xf32>
    %127 = arith.addf %125, %126 : vector<2x256xf32>
    %cst_49 = arith.constant 0.000000e+00 : f32
    %128 = vector.broadcast %cst_49 : f32 to vector<2x256xf32>
    %129 = arith.maximumf %127, %128 : vector<2x256xf32>
    %130 = arith.truncf %129 : vector<2x256xf32> to vector<2x256xbf16>
    %c0_50 = arith.constant 0 : index
    %c0_51 = arith.constant 0 : index
    %131 = vector.load %arg5[%c0_50, %c0_51] : memref<256x256xbf16, #tpu.memory_space<vmem>>, vector<256x256xbf16>
    %cst_52 = arith.constant dense<0.000000e+00> : vector<2x256xf32>
    %132 = tpu.matmul %130, %131, %cst_52 {dimension_numbers = #tpu.dot_dimension_numbers<[1], [0], [0], [1], [0, 0, 1, 1], [], []>} : vector<2x256xbf16>, vector<256x256xbf16>, vector<2x256xf32> -> vector<2x256xf32>
    %c10 = arith.constant 10 : index
    %c0_53 = arith.constant 0 : index
    %133 = vector.load %arg6[%c10, %c0_53] : memref<16x512xf32, #tpu.memory_space<vmem>>, vector<1x256xf32>
    %134 = vector.broadcast %133 : vector<1x256xf32> to vector<2x256xf32>
    %135 = arith.addf %132, %134 : vector<2x256xf32>
    %136 = tpu.iota {dimensions = array<i32: 1>} : vector<2x256xi32>
    %c200_i32 = arith.constant 200 : i32
    %137 = vector.broadcast %c200_i32 : i32 to vector<2x256xi32>
    %138 = arith.cmpi slt, %136, %137 : vector<2x256xi32>
    %cst_54 = arith.constant -1.000000e+30 : f32
    %139 = vector.broadcast %cst_54 : f32 to vector<2x256xf32>
    %140 = arith.select %138, %135, %139 : vector<2x256xi1>, vector<2x256xf32>
    %cst_55 = arith.constant dense<0xFF800000> : vector<2xf32>
    %141 = vector.multi_reduction <maximumf>, %140, %cst_55 [1] : vector<2x256xf32> to vector<2xf32>
    %142 = vector.shape_cast %141 : vector<2xf32> to vector<2x1xf32>
    %143 = vector.broadcast %142 : vector<2x1xf32> to vector<2x256xf32>
    %144 = arith.subf %140, %143 : vector<2x256xf32>
    %145 = math.exp %144 : vector<2x256xf32>
    %cst_56 = arith.constant dense<0.000000e+00> : vector<2xf32>
    %146 = vector.multi_reduction <add>, %145, %cst_56 [1] : vector<2x256xf32> to vector<2xf32>
    %147 = vector.shape_cast %146 : vector<2xf32> to vector<2x1xf32>
    %148 = math.log %147 : vector<2x1xf32>
    %149 = vector.broadcast %148 : vector<2x1xf32> to vector<2x256xf32>
    %150 = arith.subf %144, %149 : vector<2x256xf32>
    %151 = vector.extract_strided_slice %150 {offsets = [0, 0], sizes = [2, 200], strides = [1, 1]} : vector<2x256xf32> to vector<2x200xf32>
    %c0_57 = arith.constant 0 : index
    %c0_58 = arith.constant 0 : index
    %152 = vector.load %arg7[%c0_57, %c0_58] : memref<2x200xf32, #tpu.memory_space<vmem>>, vector<2x200xf32>
    tpu.vector_store %arg7[%c0_57, %c0_58], %151 {strides = array<i32>} : memref<2x200xf32, #tpu.memory_space<vmem>>, vector<2x200xf32>,
    return
  }
}

</mosaic_0001>

<bundles_post_ra>
// kernel: top_model_forward.1
= control target key start
LH: loop header
LB: loop body
LE: loop exit
PB: predicated region body
PF: predicated region fallthrough
CT: control target
= control target key end

     0   :  { %12 = vsyncpa [#allocation3], 0  ;;  %s3251_s0 = inlined_call_operand.vmem [shape: f32[2,200], index: 0, kind: input, shape index: {}]   ;;  %s3252_s1 = inlined_call_operand.vmem [shape: f32[2,200], index: 1, kind: input, shape index: {}]   ;;  %s3253_s2 = inlined_call_operand.hbm [shape: bf16[200,512], index: 2, kind: input, shape index: {}]   ;;  %s3254_s3 = inlined_call_operand.hbm [shape: bf16[200,512], index: 3, kind: input, shape index: {}]   ;;  %s3255_s4 = inlined_call_operand.hbm [shape: bf16[512,256], index: 4, kind: input, shape index: {}]   ;;  %s3256_s5 = inlined_call_operand.hbm [shape: bf16[256,256], index: 5, kind: input, shape index: {}]   ;;  %s3257_s6 = inlined_call_operand.hbm [shape: f32[16,512], index: 6, kind: input, shape index: {}]   ;;  %s3258_s7 = inlined_call_operand.hbm [shape: f32[2,200], index: 7, kind: output, shape index: {}]  }
   0x1   :  { %13 = vsyncpa [#allocation6], 0 }
   0x2   :  { %14 = vsyncpa [#allocation9], 0 }
   0x3   :  { %15 = vsyncpa [#allocation4], 0  ;;  %s2925_s24 = smov [#allocation5]   ;;  %s2785_s28 = scalar_lea.hbm %s3254_s3, 6400 }
   0x4   :  { %s37_s25 = sshll.u32 %s2925_s24, 4  ;;  %p2786_p0 = scmp.ne.s32.totalorder %s3254_s3, %s2785_s28  ;;  %s38_s25 = int_to_ptr.vmem [resolvable:$true] %s37_s25 }
   0x5   :  { %p2789_p1 = scmp.lt.u32.totalorder %s2785_s28, %s3254_s3 }
   0x7   :  { %p2791_p2 = pnand %p2789_p1, %p2786_p0 }
   0x9   :  { %2794 = shalt.err (!%p2791_p2)
}
   0xa   :  { %s2795_s10 = scalar_lea.vmem %s38_s25, 6400  ;;  %p2800_p4 = scmp.lt.s32.totalorder %s38_s25, %s38_s25 }
   0xb   :  { %p2796_p3 = scmp.ne.s32.totalorder %s38_s25, %s2795_s10  ;;  %p2801_p5 = scmp.lt.s32.totalorder %s2795_s10, %s2795_s10 }
   0xd   :  { %p2802_p6 = por %p2801_p5, %p2800_p4 }
   0xf   :  { %p2803_p7 = pnand %p2802_p6, %p2796_p3 }
  0x11   :  { %2806 = shalt.err (!%p2803_p7)
}
  0x12   :  { %s2926_s11 = smov 256   ;;  %s2927_s12 = smov 16  }
  0x13   :  { %43 = dma.hbm_to_vmem [thread:$0]  %s3254_s3, 6400, %s38_s25, [#allocation6], %s2926_s11, %s2926_s11, %s2927_s12  }
  0x14   :  { %s2928_s15 = smov [#allocation8]   ;;  %s2929_s17 = smov [#allocation2]  }
  0x15   :  { %s61_s16 = sshll.u32 %s2928_s15, 4  ;;  %s25_s18 = sshll.u32 %s2929_s17, 4  ;;  %s62_s16 = int_to_ptr.vmem [resolvable:$true] %s61_s16  ;;  %s26_s18 = int_to_ptr.vmem [resolvable:$true] %s25_s18 }
  0x16   :  { %s2807_s21 = scalar_lea.hbm %s3256_s5, 4096 }
  0x17   :  { %p2808_p8 = scmp.ne.s32.totalorder %s3256_s5, %s2807_s21  ;;  %p2811_p9 = scmp.lt.u32.totalorder %s2807_s21, %s3256_s5 }
  0x19   :  { %p2813_p10 = pnand %p2811_p9, %p2808_p8 }
  0x1b   :  { %2816 = shalt.err (!%p2813_p10)
}
  0x1c   :  { %s2817_s3 = scalar_lea.vmem %s62_s16, 4096  ;;  %p2822_p12 = scmp.lt.s32.totalorder %s62_s16, %s62_s16 }
  0x1d   :  { %p2818_p11 = scmp.ne.s32.totalorder %s62_s16, %s2817_s3  ;;  %p2823_p13 = scmp.lt.s32.totalorder %s2817_s3, %s2817_s3 }
  0x1f   :  { %p2824_p0 = por %p2823_p13, %p2822_p12 }
  0x21   :  { %p2825_p1 = pnand %p2824_p0, %p2818_p11 }
  0x23   :  { %2828 = shalt.err (!%p2825_p1)
}
  0x24   :  { %s2930_s25 = smov 128   ;;  %s2931_s27 = smov 8  }
  0x25   :  { %67 = dma.hbm_to_vmem [thread:$0]  %s3256_s5, 4096, %s62_s16, [#allocation9], %s2930_s25, %s2930_s25, %s2931_s27  }
  0x26   :  { %s2829_s9 = scalar_lea.hbm %s3253_s2, 6400 }
  0x27   :  { %p2830_p2 = scmp.ne.s32.totalorder %s3253_s2, %s2829_s9  ;;  %p2833_p3 = scmp.lt.u32.totalorder %s2829_s9, %s3253_s2 }
  0x29   :  { %p2835_p4 = pnand %p2833_p3, %p2830_p2 }
  0x2b   :  { %2838 = shalt.err (!%p2835_p4)
}
  0x2c   :  { %s2839_s17 = scalar_lea.vmem %s26_s18, 6400  ;;  %p2844_p6 = scmp.lt.s32.totalorder %s26_s18, %s26_s18 }
  0x2d   :  { %p2840_p5 = scmp.ne.s32.totalorder %s26_s18, %s2839_s17  ;;  %p2845_p7 = scmp.lt.s32.totalorder %s2839_s17, %s2839_s17 }
  0x2f   :  { %p2846_p8 = por %p2845_p7, %p2844_p6 }
  0x31   :  { %p2847_p9 = pnand %p2846_p8, %p2840_p5 }
  0x33   :  { %2850 = shalt.err (!%p2847_p9)
}
  0x34   :  { %31 = dma.hbm_to_vmem [thread:$0]  %s3253_s2, 6400, %s26_s18, [#allocation3], %s2926_s11, %s2926_s11, %s2927_s12  }
  0x35   :  { %s2932_s19 = smov [#allocation7]   ;;  %s2933_s21 = smov [#allocation10]  }
  0x36   :  { %s49_s20 = sshll.u32 %s2932_s19, 4  ;;  %s73_s22 = sshll.u32 %s2933_s21, 4  ;;  %s50_s20 = int_to_ptr.vmem [resolvable:$true] %s49_s20  ;;  %s74_s22 = int_to_ptr.vmem [resolvable:$true] %s73_s22 }
  0x37   :  { %s2851_s26 = scalar_lea.hbm %s3255_s4, 8192 }
  0x38   :  { %p2852_p10 = scmp.ne.s32.totalorder %s3255_s4, %s2851_s26  ;;  %p2855_p11 = scmp.lt.u32.totalorder %s2851_s26, %s3255_s4 }
  0x3a   :  { %p2857_p12 = pnand %p2855_p11, %p2852_p10 }
  0x3c   :  { %2860 = shalt.err (!%p2857_p12)
}
  0x3d   :  { %s2861_s2 = scalar_lea.vmem %s50_s20, 8192  ;;  %p2866_p0 = scmp.lt.s32.totalorder %s50_s20, %s50_s20 }
  0x3e   :  { %p2862_p13 = scmp.ne.s32.totalorder %s50_s20, %s2861_s2  ;;  %p2867_p1 = scmp.lt.s32.totalorder %s2861_s2, %s2861_s2 }
  0x40   :  { %p2868_p2 = por %p2867_p1, %p2866_p0 }
  0x42   :  { %p2869_p3 = pnand %p2868_p2, %p2862_p13 }
  0x44   :  { %2872 = shalt.err (!%p2869_p3)
}
  0x45   :  { %55 = dma.hbm_to_vmem [thread:$0]  %s3255_s4, 8192, %s50_s20, [#allocation6], %s2930_s25, %s2930_s25, %s2931_s27  }
  0x46   :  { %s2873_s9 = scalar_lea.hbm %s3257_s6, 1024 }
  0x47   :  { %p2874_p4 = scmp.ne.s32.totalorder %s3257_s6, %s2873_s9  ;;  %p2877_p5 = scmp.lt.u32.totalorder %s2873_s9, %s3257_s6 }
  0x49   :  { %p2879_p6 = pnand %p2877_p5, %p2874_p4 }
  0x4b   :  { %2882 = shalt.err (!%p2879_p6)
}
  0x4c   :  { %s2883_s17 = scalar_lea.vmem %s74_s22, 1024  ;;  %p2888_p8 = scmp.lt.s32.totalorder %s74_s22, %s74_s22 }
  0x4d   :  { %p2884_p7 = scmp.ne.s32.totalorder %s74_s22, %s2883_s17  ;;  %p2889_p9 = scmp.lt.s32.totalorder %s2883_s17, %s2883_s17 }
  0x4f   :  { %p2890_p10 = por %p2889_p9, %p2888_p8 }
  0x51   :  { %p2891_p11 = pnand %p2890_p10, %p2884_p7 }
  0x53   :  { %2894 = shalt.err (!%p2891_p11)
}
  0x54   :  { %s2934_s4 = smov 512   ;;  %s2935_s25 = smov 32  }
  0x55   :  { %79 = dma.hbm_to_vmem [thread:$0]  %s3257_s6, 1024, %s74_s22, [#allocation9], %s2934_s4, %s2934_s4, %s2935_s25  }
  0x56   :  { %2917 = dma.done.wait [#allocation3], 6400  }
  0x57   :  { %2918 = vsyncadd [#allocation3], 4294960896 }
  0x58   :  { %2919 = dma.done.wait [#allocation6], 14592  }
  0x59   :  { %2920 = vsyncadd [#allocation6], 4294952704 }
  0x5a   :  { %2921 = dma.done.wait [#allocation9], 5120  }
  0x5b   :  { %2922 = vsyncadd [#allocation9], 4294962176  ;;  %v2463_v0 = vld [vmem:[#allocation5 + $0x4] ss:$16 sps:$4 sm:$0xff]   ;;  %v2465_v1 = vld [vmem:[#allocation5] ss:$16 sps:$4 sm:$0xff]   ;;  %v105_v28 = vlaneseq }
  0x5c   :  { %757 = vmatprep.subr.bf16.mxu1 %v2463_v0  ;;  %v2466_v2 = vld [vmem:[#allocation2 + $0x4] ss:$16 sps:$4 sm:$0xff]   ;;  %v2468_v3 = vld [vmem:[#allocation2] ss:$16 sps:$4 sm:$0xff]   ;;  %v2936_v26 = vmov 1983009808  }
  0x5d   :  { %758 = vmatpush1.bf16.msra.mxu1 %v2465_v1  ;;  %v2469_v4 = vld [vmem:[#allocation5 + $0x24] ss:$16 sps:$4 sm:$0xff]   ;;  %v2471_v5 = vld [vmem:[#allocation5 + $0x20] ss:$16 sps:$4 sm:$0xff]   ;;  %1104 = vmatprep.subr.bf16.mxu0 %v2466_v2  ;;  %v103_v27 = vunpack.c.l.s4 %v2936_v26  ;;  %v3051_v34 = vshrl.u32 %v105_v28, 7  ;;  %vm112_vm0 = vcmask 1041408  }
  0x5e   :  { %v2472_v6 = vld [vmem:[#allocation2 + $0x24] ss:$16 sps:$4 sm:$0xff]   ;;  %1105 = vmatpush1.bf16.msra.mxu0 %v2468_v3  ;;  %759 = vmatprep.subr.bf16.mxu1 %v2469_v4  ;;  %v2474_v7 = vld [vmem:[#allocation2 + $0x20] ss:$16 sps:$4 sm:$0xff]   ;;  %vm744_vm1 = vcmask 1043456   ;;  %vm120_vm2 = vcmask 582656  }
  0x5f   :  { %1106 = vmatprep.subr.bf16.mxu0 %v2472_v6  ;;  %v2475_v8 = vld [vmem:[#allocation5 + $0x44] ss:$16 sps:$4 sm:$0xff]   ;;  %v2477_v9 = vld [vmem:[#allocation5 + $0x40] ss:$16 sps:$4 sm:$0xff]   ;;  %v104_v33 = vunpack.c.0.s8 %v103_v27  ;;  %vm740_vm3 = vcmask 588800   ;;  %vm2216_vm5 = vcmask 584706  }
  0x60   :  { %v2478_v10 = vld [vmem:[#allocation2 + $0x44] ss:$16 sps:$4 sm:$0xff]   ;;  %v2480_v12 = vld [vmem:[#allocation2 + $0x40] ss:$16 sps:$4 sm:$0xff]   ;;  %vm2217_vm6 = vmor %vm2216_vm5, %vm112_vm0 }
  0x61   :  { %760 = vmatpush1.bf16.msra.mxu1 %v2471_v5  ;;  %v2481_v11 = vld [vmem:[#allocation5 + $0x64] ss:$16 sps:$4 sm:$0xff]   ;;  %v2483_v14 = vld [vmem:[#allocation5 + $0x60] ss:$16 sps:$4 sm:$0xff]   ;;  %v3054_v39 = vsub.s32 %v104_v33, %v3051_v34 }
  0x62   :  { %761 = vmatprep.subr.bf16.mxu1 %v2475_v8  ;;  %1107 = vmatpush1.bf16.msra.mxu0 %v2474_v7  ;;  %v2484_v13 = vld [vmem:[#allocation2 + $0x64] ss:$16 sps:$4 sm:$0xff]   ;;  %v2486_v16 = vld [vmem:[#allocation2 + $0x60] ss:$16 sps:$4 sm:$0xff]  }
  0x63   :  { %1108 = vmatprep.subr.bf16.mxu0 %v2478_v10  ;;  %v2487_v15 = vld [vmem:[#allocation5 + $0x84] ss:$16 sps:$4 sm:$0xff]   ;;  %v2489_v18 = vld [vmem:[#allocation5 + $0x80] ss:$16 sps:$4 sm:$0xff]  }
  0x64   :  { %v2490_v17 = vld [vmem:[#allocation2 + $0x84] ss:$16 sps:$4 sm:$0xff]   ;;  %v2492_v20 = vld [vmem:[#allocation2 + $0x80] ss:$16 sps:$4 sm:$0xff]  }
  0x65   :  { %762 = vmatpush1.bf16.msra.mxu1 %v2477_v9  ;;  %v2493_v19 = vld [vmem:[#allocation5 + $0xa4] ss:$16 sps:$4 sm:$0xff]   ;;  %v2495_v22 = vld [vmem:[#allocation5 + $0xa0] ss:$16 sps:$4 sm:$0xff]  }
  0x66   :  { %763 = vmatprep.subr.bf16.mxu1 %v2481_v11  ;;  %1109 = vmatpush1.bf16.msra.mxu0 %v2480_v12  ;;  %v2496_v21 = vld [vmem:[#allocation2 + $0xa4] ss:$16 sps:$4 sm:$0xff]   ;;  %v2498_v24 = vld [vmem:[#allocation2 + $0xa0] ss:$16 sps:$4 sm:$0xff]  }
  0x67   :  { %1110 = vmatprep.subr.bf16.mxu0 %v2484_v13  ;;  %v2499_v23 = vld [vmem:[#allocation5 + $0xc4] ss:$16 sps:$4 sm:$0xff]   ;;  %v2501_v29 = vld [vmem:[#allocation5 + $0xc0] ss:$16 sps:$4 sm:$0xff]  }
  0x68   :  { %v2502_v25 = vld [vmem:[#allocation2 + $0xc4] ss:$16 sps:$4 sm:$0xff]   ;;  %v2504_v31 = vld [vmem:[#allocation2 + $0xc0] ss:$16 sps:$4 sm:$0xff]  }
  0x69   :  { %764 = vmatpush1.bf16.msra.mxu1 %v2483_v14  ;;  %v2505_v30 = vld [vmem:[#allocation5 + $0xe4] ss:$16 sps:$4 sm:$0xff]   ;;  %v2507_v35 = vld [vmem:[#allocation5 + $0xe0] ss:$16 sps:$4 sm:$0xff]  }
  0x6a   :  { %765 = vmatprep.subr.bf16.mxu1 %v2487_v15  ;;  %1111 = vmatpush1.bf16.msra.mxu0 %v2486_v16  ;;  %v2508_v32 = vld [vmem:[#allocation2 + $0xe4] ss:$16 sps:$4 sm:$0xff]   ;;  %v2510_v37 = vld [vmem:[#allocation2 + $0xe0] ss:$16 sps:$4 sm:$0xff]  }
  0x6b   :  { %1112 = vmatprep.subr.bf16.mxu0 %v2490_v17  ;;  %v2511_v36 = vld [vmem:[#allocation5 + $0x104] ss:$16 sps:$4 sm:$0xff]   ;;  %v2513_v40 = vld [vmem:[#allocation5 + $0x100] ss:$16 sps:$4 sm:$0xff]  }
  0x6c   :  { %v2514_v38 = vld [vmem:[#allocation2 + $0x104] ss:$16 sps:$4 sm:$0xff]   ;;  %v3063_v44 = vld [vmem:[%s3252_s1] sm:$0xf] }
  0x6d   :  { %766 = vmatpush1.bf16.msra.mxu1 %v2489_v18  ;;  %v2517_v41 = vld [vmem:[#allocation5 + $0x124] ss:$16 sps:$4 sm:$0xff]   ;;  %v2516_v45 = vld [vmem:[#allocation2 + $0x100] ss:$16 sps:$4 sm:$0xff]   ;;  %v243_v48 = vrot.slane %v3063_v44, %v3054_v39  ;;  %v263_v49 = vmul.f32 %v3063_v44, %v3063_v44 }
  0x6e   :  { %767 = vmatprep.subr.bf16.mxu1 %v2493_v19  ;;  %1113 = vmatpush1.bf16.msra.mxu0 %v2492_v20  ;;  %v3056_v42 = vld [vmem:[#allocation5 + $0x180] sm:$0xff]  ;;  %v3058_v43 = vld [vmem:[#allocation2 + $0x180] sm:$0xff] }
  0x6f   :  { %1114 = vmatprep.subr.bf16.mxu0 %v2496_v21  ;;  %v2520_v46 = vld [vmem:[#allocation2 + $0x124] ss:$16 sps:$4 sm:$0xff]   ;;  %v2284_v47 = vcombine.low %v3056_v42, %v3056_v42  ;;  %v2519_v50 = vld [vmem:[#allocation5 + $0x120] ss:$16 sps:$4 sm:$0xff]   ;;  %v2340_v51 = vcombine.low %v3058_v43, %v3058_v43  ;;  %v2285_v54 = vcombine.high %v3056_v42, %v3056_v42  ;;  %v244_v55 = vcombine.high %v243_v48, %v243_v48 }
  0x70   :  { %v3076_v52 = vld [vmem:[%s3251_s0] sm:$0xf]  ;;  %v2523_v53 = vld [vmem:[#allocation5 + $0x144] ss:$16 sps:$4 sm:$0xff]   ;;  %v247_v56 = vsel %vm112_vm0, %v243_v48, 0.0  ;;  %v271_v57 = vrot.slane %v263_v49, %v3054_v39  ;;  %v2341_v60 = vcombine.high %v3058_v43, %v3058_v43  ;;  %s2937_s0 = smov [#allocation11]  }
  0x71   :  { %768 = vmatpush1.bf16.msra.mxu1 %v2495_v22  ;;  %v2522_v58 = vld [vmem:[#allocation2 + $0x120] ss:$16 sps:$4 sm:$0xff]   ;;  %v2526_v59 = vld [vmem:[#allocation2 + $0x144] ss:$16 sps:$4 sm:$0xff]   ;;  %v248_v61 = vrot.slane %v247_v56, 4  ;;  %v108_v62 = vrot.slane %v3076_v52, %v3054_v39  ;;  %v131_v63 = vmul.f32 %v3076_v52, %v3076_v52  ;;  %v3089_v0 = vsel %vm744_vm1, %v2284_v47, 0 }
  0x72   :  { %769 = vmatprep.subr.bf16.mxu1 %v2499_v23  ;;  %1115 = vmatpush1.bf16.msra.mxu0 %v2498_v24  ;;  %v254_v1 = vsel %vm120_vm2, %v244_v55, 0.0  ;;  %v272_v2 = vcombine.high %v271_v57, %v271_v57  ;;  %v275_v3 = vsel %vm112_vm0, %v271_v57, 0.0  ;;  %v2525_v4 = vld [vmem:[#allocation5 + $0x140] ss:$16 sps:$4 sm:$0xff]   ;;  %v3094_v5 = vsel %vm744_vm1, %v2340_v51, 0  ;;  %s2225_s20 = sshll.u32 %s2937_s0, 4  ;;  %s2226_s20 = int_to_ptr.vmem [resolvable:$true] %s2225_s20 }
  0x73   :  { %1116 = vmatprep.subr.bf16.mxu0 %v2502_v25  ;;  %v249_v6 = vadd.f32 %v248_v61, %v247_v56  ;;  %v255_v7 = vrot.slane %v254_v1, 4  ;;  %v276_v8 = vrot.slane %v275_v3, 4  ;;  %v2529_v9 = vld [vmem:[#allocation5 + $0x164] ss:$16 sps:$4 sm:$0xff]   ;;  %v109_v11 = vcombine.high %v108_v62, %v108_v62  ;;  %v2528_v14 = vld [vmem:[#allocation2 + $0x140] ss:$16 sps:$4 sm:$0xff]   ;;  %p2900_p13 = scmp.lt.s32.totalorder %s2226_s20, %s2226_s20 }
  0x74   :  { %v282_v10 = vsel %vm120_vm2, %v272_v2, 0.0  ;;  %v113_v12 = vsel %vm112_vm0, %v108_v62, 0.0  ;;  %v139_v13 = vrot.slane %v131_v63, %v3054_v39  ;;  %v2532_v19 = vld [vmem:[#allocation2 + $0x164] ss:$16 sps:$4 sm:$0xff]   ;;  %v2531_v24 = vld [vmem:[#allocation5 + $0x160] ss:$16 sps:$4 sm:$0xff]  }
  0x75   :  { %770 = vmatpush1.bf16.msra.mxu1 %v2501_v29  ;;  %v250_v15 = vrot.slane %v249_v6, 2  ;;  %v256_v16 = vadd.f32 %v255_v7, %v254_v1  ;;  %v277_v17 = vadd.f32 %v276_v8, %v275_v3  ;;  %v283_v18 = vrot.slane %v282_v10, 4  ;;  %s2895_s21 = scalar_lea.vmem %s2226_s20, 64 }
  0x76   :  { %771 = vmatprep.subr.bf16.mxu1 %v2505_v30  ;;  %1117 = vmatpush1.bf16.msra.mxu0 %v2504_v31  ;;  %v114_v20 = vrot.slane %v113_v12, 4  ;;  %v121_v21 = vsel %vm120_vm2, %v109_v11, 0.0  ;;  %v140_v22 = vcombine.high %v139_v13, %v139_v13  ;;  %v143_v23 = vsel %vm112_vm0, %v139_v13, 0.0  ;;  %p2896_p12 = scmp.ne.s32.totalorder %s2226_s20, %s2895_s21  ;;  %p2901_p0 = scmp.lt.s32.totalorder %s2895_s21, %s2895_s21 }
  0x77   :  { %1118 = vmatprep.subr.bf16.mxu0 %v2508_v32  ;;  %v251_v25 = vadd.f32 %v250_v15, %v249_v6  ;;  %v257_v26 = vrot.slane %v256_v16, 2  ;;  %v278_v27 = vrot.slane %v277_v17, 2  ;;  %v284_v29 = vadd.f32 %v283_v18, %v282_v10 }
  0x78   :  { %v115_v30 = vadd.f32 %v114_v20, %v113_v12  ;;  %v122_v31 = vrot.slane %v121_v21, 4  ;;  %v144_v32 = vrot.slane %v143_v23, 4  ;;  %v150_v33 = vsel %vm120_vm2, %v140_v22, 0.0  ;;  %p2902_p1 = por %p2901_p0, %p2900_p13 }
  0x79   :  { %772 = vmatpush1.bf16.msra.mxu1 %v2507_v35  ;;  %v2534_v35 = vld [vmem:[#allocation2 + $0x160] ss:$16 sps:$4 sm:$0xff]   ;;  %v151_v47 = vrot.slane %v150_v33, 4 }
  0x7a   :  { %773 = vmatprep.subr.bf16.mxu1 %v2511_v36  ;;  %1119 = vmatpush1.bf16.msra.mxu0 %v2510_v37  ;;  %v252_v36 = vrot.slane %v251_v25, 1  ;;  %v258_v37 = vadd.f32 %v257_v26, %v256_v16  ;;  %p2903_p2 = pnand %p2902_p1, %p2896_p12 }
  0x7b   :  { %1120 = vmatprep.subr.bf16.mxu0 %v2514_v38  ;;  %v279_v38 = vadd.f32 %v278_v27, %v277_v17 }
  0x7c   :  { %v253_v48 = vadd.f32 %v252_v36, %v251_v25  ;;  %v259_v49 = vrot.slane %v258_v37, 1 }
  0x7d   :  { %774 = vmatpush1.bf16.msra.mxu1 %v2513_v40  ;;  %v285_v40 = vrot.slane %v284_v29, 2 }
  0x7e   :  { %775 = vmatprep.subr.bf16.mxu1 %v2517_v41  ;;  %1121 = vmatpush1.bf16.msra.mxu0 %v2516_v45  ;;  %v116_v41 = vrot.slane %v115_v30, 2  ;;  %v123_v45 = vadd.f32 %v122_v31, %v121_v21  ;;  %v261_v61 = vmul.f32 0.5, %v253_v48  ;;  %v3116_v31 = vsub.s32 1, %v3051_v34  ;;  %v98_v48 = vld [vmem:[#allocation10] ss:$8 sm:$0x3] }
  0x7f   :  { %1122 = vmatprep.subr.bf16.mxu0 %v2520_v46  ;;  %v145_v46 = vadd.f32 %v144_v32, %v143_v23  ;;  %v286_v51 = vadd.f32 %v285_v40, %v284_v29 }
  0x80   :  { %v117_v55 = vadd.f32 %v116_v41, %v115_v30  ;;  %v124_v56 = vrot.slane %v123_v45, 2  ;;  %v291_v7 = vmul.f32 %v261_v61, %v261_v61  ;;  %v3113_v30 = vsub.s32 0, %v3051_v34 }
  0x81   :  { %776 = vmatpush1.bf16.msra.mxu1 %v2519_v50  ;;  %v280_v50 = vrot.slane %v279_v38, 1  ;;  %v146_v57 = vrot.slane %v145_v46, 2  ;;  %v287_v63 = vrot.slane %v286_v51, 1 }
  0x82   :  { %777 = vmatprep.subr.bf16.mxu1 %v2523_v53  ;;  %1123 = vmatpush1.bf16.msra.mxu0 %v2522_v58  ;;  %v2541_v53 = vld [vmem:[#allocation5 + $0xc] ss:$16 sps:$4 sm:$0xff]   ;;  %v152_v58 = vadd.f32 %v151_v47, %v150_v33  ;;  %v118_v1 = vrot.slane %v117_v55, 1  ;;  %v125_v2 = vadd.f32 %v124_v56, %v123_v45  ;;  %v197_v56 = vrot.slane %v98_v48, %v3113_v30 }
  0x83   :  { %1124 = vmatprep.subr.bf16.mxu0 %v2526_v59  ;;  %v260_v59 = vadd.f32 %v259_v49, %v258_v37  ;;  %v281_v62 = vadd.f32 %v280_v50, %v279_v38  ;;  %v147_v42 = vadd.f32 %v146_v57, %v145_v46  ;;  %v235_v38 = vld [vmem:[#allocation10 + $0x3] ss:$8 sm:$0x3]  ;;  %v201_v57 = vrot.slane %v98_v48, %v3116_v31  ;;  %v2624_v48 = vld [vmem:[#allocation7 + $0x30] ss:$8 sps:$4 sm:$0xff]  }
  0x84   :  { %v153_v3 = vrot.slane %v152_v58, 2  ;;  %v119_v8 = vadd.f32 %v118_v1, %v117_v55  ;;  %v348_v46 = vrot.slane %v235_v38, %v3113_v30  ;;  %v352_v47 = vrot.slane %v235_v38, %v3116_v31  ;;  %v2548_v38 = vld [vmem:[#allocation5 + $0x68] ss:$16 sps:$4 sm:$0xff]  }
  0x85   :  { %778 = vmatpush1.bf16.msra.mxu1 %v2525_v4  ;;  %v288_v4 = vadd.f32 %v287_v63, %v286_v51  ;;  %v289_v6 = vmul.f32 0.5, %v281_v62  ;;  %v148_v10 = vrot.slane %v147_v42, 1  ;;  %v2617_v62 = vld [vmem:[#allocation7 + $0x4] ss:$8 sps:$4 sm:$0xff]  }
  0x86   :  { %779 = vmatprep.subr.bf16.mxu1 %v2529_v9  ;;  %1125 = vmatpush1.bf16.msra.mxu0 %v2528_v14  ;;  %v126_v9 = vrot.slane %v125_v2, 1  ;;  %v154_v11 = vadd.f32 %v153_v3, %v152_v58  ;;  %v129_v14 = vmul.f32 0.5, %v119_v8 }
  0x87   :  { %1126 = vmatprep.subr.bf16.mxu0 %v2532_v19  ;;  %v290_v43 = vmul.f32 0.5, %v288_v4  ;;  %v149_v15 = vadd.f32 %v148_v10, %v147_v42  ;;  %v202_v4 = vcombine.low %v197_v56, %v201_v57  ;;  %v2565_v56 = vld [vmem:[#allocation5 + $0x10c] ss:$16 sps:$4 sm:$0xff]   ;;  %v2563_v57 = vld [vmem:[#allocation5 + $0x108] ss:$16 sps:$4 sm:$0xff]  }
  0x88   :  { %v127_v13 = vadd.f32 %v126_v9, %v125_v2  ;;  %v155_v16 = vrot.slane %v154_v11, 1  ;;  %v159_v21 = vmul.f32 %v129_v14, %v129_v14 }
  0x89   :  { %780 = vmatpush1.bf16.msra.mxu1 %v2531_v24  ;;  %v157_v20 = vmul.f32 0.5, %v149_v15 }
  0x8a   :  { %2288 = vmatprep.subr.msk.bf16.mxu1 %vm744_vm1, %v2285_v54  ;;  %1127 = vmatpush1.bf16.msra.mxu0 %v2534_v35  ;;  %v262_v54 = vmul.f32 0.5, %v260_v59  ;;  %v130_v18 = vmul.f32 0.5, %v127_v13  ;;  %v156_v19 = vadd.f32 %v155_v16, %v154_v11  ;;  %v233_v35 = vld [vmem:[#allocation10 + $0x2] ss:$8 sm:$0x3] }
  0x8b   :  { %2344 = vmatprep.subr.msk.bf16.mxu0 %vm744_vm1, %v2341_v60  ;;  %v293_v60 = vsub.f32 %v289_v6, %v291_v7  ;;  %v161_v26 = vsub.f32 %v157_v20, %v159_v21  ;;  %v329_v40 = vrot.slane %v233_v35, %v3113_v30  ;;  %v333_v41 = vrot.slane %v233_v35, %v3116_v31  ;;  %v2544_v21 = vld [vmem:[#allocation5 + $0x2c] ss:$16 sps:$4 sm:$0xff]  }
  0x8c   :  { %v292_v12 = vmul.f32 %v262_v54, %v262_v54  ;;  %v158_v24 = vmul.f32 0.5, %v156_v19  ;;  %v160_v25 = vmul.f32 %v130_v18, %v130_v18  ;;  %v299_v36 = vcombine.low %v261_v61, %v262_v54  ;;  %v2539_v19 = vld [vmem:[#allocation5 + $0x8] ss:$16 sps:$4 sm:$0xff]   ;;  %v2550_v35 = vld [vmem:[#allocation5 + $0x6c] ss:$16 sps:$4 sm:$0xff]  }
  0x8d   :  { %782 = vmatpush1.bf16.msra.mxu1 %v3089_v0  ;;  %v295_v0 = vmax.f32 %v293_v60, 0.0  ;;  %v163_v29 = vmax.f32 %v161_v26, 0.0  ;;  %v167_v50 = vcombine.low %v129_v14, %v130_v18  ;;  %v334_v51 = vcombine.low %v329_v40, %v333_v41  ;;  %v2547_v26 = vld [vmem:[#allocation5 + $0x4c] ss:$16 sps:$4 sm:$0xff]   ;;  %v2621_v41 = vld [vmem:[#allocation7 + $0x20] ss:$8 sps:$4 sm:$0xff]  }
  0x8e   :  { %798 = vmatprep.subr.bf16.mxu1 %v2541_v53  ;;  %1129 = vmatpush1.bf16.msra.mxu0 %v3094_v5  ;;  %v294_v17 = vsub.f32 %v290_v43, %v292_v12  ;;  %v162_v5 = vsub.f32 %v158_v24, %v160_v25  ;;  %v306_v45 = vrot.slane %v299_v36, %v3054_v39  ;;  %v100_v53 = vld [vmem:[#allocation10 + $0x1] ss:$8 sm:$0x3]  ;;  %v2618_v36 = vld [vmem:[#allocation7 + $0x10] ss:$8 sps:$4 sm:$0xff]  }
  0x8f   :  { %v309_v23 = vadd.f32 1e-05, %v295_v0  ;;  %v177_v33 = vadd.f32 1e-05, %v163_v29  ;;  %v353_v61 = vcombine.low %v348_v46, %v352_v47  ;;  %v174_v63 = vrot.slane %v167_v50, %v3054_v39  ;;  %1768 = vmatprep.subr.bf16.mxu0 %v2617_v62  ;;  %v2542_v24 = vld [vmem:[#allocation5 + $0x28] ss:$16 sps:$4 sm:$0xff]  }
  0x90   :  { %v296_v22 = vmax.f32 %v294_v17, 0.0  ;;  %v164_v32 = vmax.f32 %v162_v5, 0.0  ;;  %v308_v58 = vsub.f32 %v3063_v44, %v306_v45  ;;  %v216_v1 = vrot.slane %v100_v53, %v3113_v30  ;;  %v2620_v29 = vld [vmem:[#allocation7 + $0x14] ss:$8 sps:$4 sm:$0xff]   ;;  %v2551_v46 = vld [vmem:[#allocation5 + $0x88] ss:$16 sps:$4 sm:$0xff]  }
  0x91   :  { %2759 = vrsqrt.f32 %v309_v23  ;;  %v220_v2 = vrot.slane %v100_v53, %v3116_v31  ;;  %v341_v54 = vrot.slane %v334_v51, %v3054_v39  ;;  %v360_v44 = vrot.slane %v353_v61, %v3054_v39  ;;  %v2553_v40 = vld [vmem:[#allocation5 + $0x8c] ss:$16 sps:$4 sm:$0xff]   ;;  %v2557_v51 = vld [vmem:[#allocation5 + $0xc8] ss:$16 sps:$4 sm:$0xff]  }
  0x92   :  { %v310_v27 = vadd.f32 1e-05, %v296_v22  ;;  %v178_v37 = vadd.f32 1e-05, %v164_v32  ;;  %v176_v8 = vsub.f32 %v3076_v52, %v174_v63  ;;  %v209_v12 = vrot.slane %v202_v4, %v3054_v39  ;;  %v2626_v45 = vld [vmem:[#allocation7 + $0x34] ss:$8 sps:$4 sm:$0xff]  }
  0x93   :  { %v221_v10 = vcombine.low %v216_v1, %v220_v2  ;;  %v2556_v47 = vld [vmem:[#allocation5 + $0xac] ss:$16 sps:$4 sm:$0xff]   ;;  %v2569_v62 = vld [vmem:[#allocation5 + $0x148] ss:$16 sps:$4 sm:$0xff]  }
  0x94   :  { %2761 = vrsqrt.f32 %v310_v27  ;;  %v2615_v27 = vld [vmem:[#allocation7] ss:$8 sps:$4 sm:$0xff]   ;;  %v2559_v50 = vld [vmem:[#allocation5 + $0xcc] ss:$16 sps:$4 sm:$0xff]  }
  0x95   :  { %2763 = vrsqrt.f32 %v177_v33  ;;  %v228_v14 = vrot.slane %v221_v10, %v3054_v39  ;;  %v2545_v33 = vld [vmem:[#allocation5 + $0x48] ss:$16 sps:$4 sm:$0xff]   ;;  %v2562_v53 = vld [vmem:[#allocation5 + $0xec] ss:$16 sps:$4 sm:$0xff]  }
  0x96   :  { %2765 = vrsqrt.f32 %v178_v37  ;;  %v2623_v37 = vld [vmem:[#allocation7 + $0x24] ss:$8 sps:$4 sm:$0xff]   ;;  %v489_v1 = vld [vmem:[#allocation5 + $0x188] sm:$0xff] }
  0x97   :  { %v2571_v61 = vld [vmem:[#allocation5 + $0x14c] ss:$16 sps:$4 sm:$0xff]   ;;  %v2572_v2 = vld [vmem:[#allocation5 + $0x168] ss:$16 sps:$4 sm:$0xff]  }
  0x98   :  { %v2574_v63 = vld [vmem:[#allocation5 + $0x16c] ss:$16 sps:$4 sm:$0xff]  }
  0x99   :  { %v2579_v4 = vld [vmem:[#allocation2 + $0xc] ss:$16 sps:$4 sm:$0xff]  }
  0x9a   :  { %v2588_v10 = vld [vmem:[#allocation2 + $0x6c] ss:$16 sps:$4 sm:$0xff]  }
  0x9b   :  { %v2760_v49 = vpop.eup %2759 }
  0x9e   :  { %v2762_v55 = vpop.eup %2761 }
  0x9f   :  { %v315_v59 = vcombine.low %v2760_v49, %v2762_v55  ;;  %v2764_v42 = vpop.eup %2763  ;;  %v2554_v49 = vld [vmem:[#allocation5 + $0xa8] ss:$16 sps:$4 sm:$0xff]  }
  0xa0   :  { %v2766_v6 = vpop.eup %2765  ;;  %v2560_v55 = vld [vmem:[#allocation5 + $0xe8] ss:$16 sps:$4 sm:$0xff]  }
  0xa1   :  { %v322_v3 = vrot.slane %v315_v59, %v3054_v39  ;;  %v183_v9 = vcombine.low %v2764_v42, %v2766_v6  ;;  %v2566_v59 = vld [vmem:[#allocation5 + $0x128] ss:$16 sps:$4 sm:$0xff]   ;;  %v2287_v42 = vcombine.high %v489_v1, %v489_v1 }
  0xa2   :  { %v2577_v6 = vld [vmem:[#allocation2 + $0x8] ss:$16 sps:$4 sm:$0xff]  }
  0xa3   :  { %v324_v7 = vmul.f32 %v322_v3, %v308_v58  ;;  %v190_v43 = vrot.slane %v183_v9, %v3054_v39  ;;  %v2568_v58 = vld [vmem:[#allocation5 + $0x12c] ss:$16 sps:$4 sm:$0xff]   ;;  %v2286_v3 = vcombine.low %v489_v1, %v489_v1  ;;  %v2583_v9 = vld [vmem:[#allocation2 + $0x48] ss:$16 sps:$4 sm:$0xff]  }
  0xa4   :  { %v3158_v1 = vld [vmem:[#allocation10 + $0x4] ss:$8 sm:$0xf] }
  0xa5   :  { %v343_v11 = vmul.f32 %v341_v54, %v324_v7  ;;  %v192_v13 = vmul.f32 %v190_v43, %v176_v8  ;;  %v752_v54 = vsel %vm744_vm1, %v2286_v3, 0  ;;  %v2582_v7 = vld [vmem:[#allocation2 + $0x2c] ss:$16 sps:$4 sm:$0xff]  }
  0xa6   :  { %v2585_v8 = vld [vmem:[#allocation2 + $0x4c] ss:$16 sps:$4 sm:$0xff]  }
  0xa7   :  { %v362_v60 = vadd.f32 %v360_v44, %v343_v11  ;;  %v211_v16 = vmul.f32 %v209_v12, %v192_v13  ;;  %v2580_v44 = vld [vmem:[#allocation2 + $0x28] ss:$16 sps:$4 sm:$0xff]   ;;  %v2591_v43 = vld [vmem:[#allocation2 + $0x8c] ss:$16 sps:$4 sm:$0xff]  }
  0xa8   :  { %v2586_v11 = vld [vmem:[#allocation2 + $0x68] ss:$16 sps:$4 sm:$0xff]  }
  0xa9   :  { %v363_v15 = vmax.f32 %v362_v60, 0.0  ;;  %v230_v0 = vadd.f32 %v228_v14, %v211_v16  ;;  %v2589_v12 = vld [vmem:[#allocation2 + $0x88] ss:$16 sps:$4 sm:$0xff]   ;;  %v2594_v60 = vld [vmem:[#allocation2 + $0xac] ss:$16 sps:$4 sm:$0xff]  }
  0xaa   :  { %v2592_v13 = vld [vmem:[#allocation2 + $0xa8] ss:$16 sps:$4 sm:$0xff]   ;;  %v2597_v14 = vld [vmem:[#allocation2 + $0xcc] ss:$16 sps:$4 sm:$0xff]  }
  0xab   :  { %v434_v17 = vrot.slane %v363_v15, %v3054_v39  ;;  %v231_v52 = vmax.f32 %v230_v0, 0.0  ;;  %v2595_v15 = vld [vmem:[#allocation2 + $0xc8] ss:$16 sps:$4 sm:$0xff]   ;;  %v2600_v16 = vld [vmem:[#allocation2 + $0xec] ss:$16 sps:$4 sm:$0xff]  }
  0xac   :  { %v2603_v0 = vld [vmem:[#allocation2 + $0x10c] ss:$16 sps:$4 sm:$0xff]  }
  0xad   :  { %v435_v18 = vcombine.high %v434_v17, %v434_v17  ;;  %v3137_v20 = vpack.c.bf16 %v434_v17, %v434_v17  ;;  %v371_v23 = vrot.slane %v231_v52, %v3054_v39  ;;  %v2598_v17 = vld [vmem:[#allocation2 + $0xe8] ss:$16 sps:$4 sm:$0xff]  }
  0xae   :  { %v2604_v52 = vld [vmem:[#allocation2 + $0x128] ss:$16 sps:$4 sm:$0xff]  }
  0xaf   :  { %v439_v22 = vpack.c.bf16 %v435_v18, %v435_v18  ;;  %v372_v25 = vcombine.high %v371_v23, %v371_v23  ;;  %v3142_v5 = vpack.c.bf16 %v371_v23, %v371_v23  ;;  %v2601_v18 = vld [vmem:[#allocation2 + $0x108] ss:$16 sps:$4 sm:$0xff]   ;;  %v2612_v23 = vld [vmem:[#allocation2 + $0x16c] ss:$16 sps:$4 sm:$0xff]  }
  0xb1   :  { %2289 = vmatprep.mubr.msk.bf16.mxu1 %vm740_vm3, %v439_v22  ;;  %v3145_v32 = vpack.c.bf16 %v372_v25, %v372_v25  ;;  %v426_v25 = vld [vmem:[#allocation2 + $0x188] sm:$0xff] }
  0xb2   :  { %790 = vmatmul.mubr.bf16.vlgmr.msra.gmra.mrb[0].mxu1 %v3137_v20 }
  0xb3   :  { %799 = vmatpush1.bf16.msra.mxu1 %v2539_v19  ;;  %2291 = vmatprep.mubr.msk.bf16.mxu1 %vm740_vm3, %v439_v22  ;;  %v2606_v19 = vld [vmem:[#allocation2 + $0x12c] ss:$16 sps:$4 sm:$0xff]  }
  0xb4   :  { %800 = vmatprep.subr.bf16.mxu1 %v2544_v21  ;;  %2345 = vmatprep.mubr.msk.bf16.mxu0 %vm740_vm3, %v3145_v32  ;;  %v2607_v21 = vld [vmem:[#allocation2 + $0x148] ss:$16 sps:$4 sm:$0xff]   ;;  %v2629_v22 = vld [vmem:[#allocation7 + $0x44] ss:$8 sps:$4 sm:$0xff]  }
  0xb5   :  { %1137 = vmatmul.mubr.bf16.vlgmr.msra.gmra.mrb[0].mxu0 %v3142_v5 }
  0xb6   :  { %1769 = vmatpush1.bf16.msra.mxu0 %v2615_v27  ;;  %v2632_v27 = vld [vmem:[#allocation7 + $0x54] ss:$8 sps:$4 sm:$0xff]  }
  0xb7   :  { %801 = vmatpush1.bf16.msra.mxu1 %v2542_v24  ;;  %1770 = vmatprep.subr.bf16.mxu0 %v2620_v29  ;;  %v2627_v24 = vld [vmem:[#allocation7 + $0x40] ss:$8 sps:$4 sm:$0xff]   ;;  %v2343_v29 = vcombine.high %v426_v25, %v426_v25 }
  0xb8   :  { %802 = vmatprep.subr.bf16.mxu1 %v2547_v26  ;;  %v2610_v26 = vld [vmem:[#allocation2 + $0x168] ss:$16 sps:$4 sm:$0xff]  }
  0xba   :  { %1771 = vmatpush1.bf16.msra.mxu0 %v2618_v36 }
  0xbb   :  { %803 = vmatpush1.bf16.msra.mxu1 %v2545_v33  ;;  %1772 = vmatprep.subr.bf16.mxu0 %v2623_v37  ;;  %v2630_v33 = vld [vmem:[#allocation7 + $0x50] ss:$8 sps:$4 sm:$0xff]   ;;  %v2633_v37 = vld [vmem:[#allocation7 + $0x60] ss:$8 sps:$4 sm:$0xff]  }
  0xbc   :  { %804 = vmatprep.subr.bf16.mxu1 %v2550_v35  ;;  %v2635_v35 = vld [vmem:[#allocation7 + $0x64] ss:$8 sps:$4 sm:$0xff]  }
  0xbe   :  { %1773 = vmatpush1.bf16.msra.mxu0 %v2621_v41  ;;  %v2641_v41 = vld [vmem:[#allocation7 + $0x84] ss:$8 sps:$4 sm:$0xff]  }
  0xbf   :  { %805 = vmatpush1.bf16.msra.mxu1 %v2548_v38  ;;  %1774 = vmatprep.subr.bf16.mxu0 %v2626_v45  ;;  %v2638_v38 = vld [vmem:[#allocation7 + $0x74] ss:$8 sps:$4 sm:$0xff]   ;;  %v2639_v45 = vld [vmem:[#allocation7 + $0x80] ss:$8 sps:$4 sm:$0xff]  }
  0xc0   :  { %806 = vmatprep.subr.bf16.mxu1 %v2553_v40  ;;  %v2636_v40 = vld [vmem:[#allocation7 + $0x70] ss:$8 sps:$4 sm:$0xff]  }
  0xc2   :  { %1775 = vmatpush1.bf16.msra.mxu0 %v2624_v48  ;;  %v2647_v48 = vld [vmem:[#allocation7 + $0xa4] ss:$8 sps:$4 sm:$0xff]  }
  0xc3   :  { %807 = vmatpush1.bf16.msra.mxu1 %v2551_v46  ;;  %1776 = vmatprep.subr.bf16.mxu0 %v2629_v22  ;;  %v2644_v46 = vld [vmem:[#allocation7 + $0x94] ss:$8 sps:$4 sm:$0xff]  }
  0xc4   :  { %808 = vmatprep.subr.bf16.mxu1 %v2556_v47  ;;  %v2642_v47 = vld [vmem:[#allocation7 + $0x90] ss:$8 sps:$4 sm:$0xff]  }
  0xc6   :  { %1777 = vmatpush1.bf16.msra.mxu0 %v2627_v24 }
  0xc7   :  { %809 = vmatpush1.bf16.msra.mxu1 %v2554_v49  ;;  %1778 = vmatprep.subr.bf16.mxu0 %v2632_v27  ;;  %v2645_v49 = vld [vmem:[#allocation7 + $0xa0] ss:$8 sps:$4 sm:$0xff]  }
  0xc8   :  { %810 = vmatprep.subr.bf16.mxu1 %v2559_v50  ;;  %v2650_v50 = vld [vmem:[#allocation7 + $0xb4] ss:$8 sps:$4 sm:$0xff]  }
  0xca   :  { %1779 = vmatpush1.bf16.msra.mxu0 %v2630_v33 }
  0xcb   :  { %811 = vmatpush1.bf16.msra.mxu1 %v2557_v51  ;;  %1780 = vmatprep.subr.bf16.mxu0 %v2635_v35  ;;  %v2648_v51 = vld [vmem:[#allocation7 + $0xb0] ss:$8 sps:$4 sm:$0xff]  }
  0xcc   :  { %812 = vmatprep.subr.bf16.mxu1 %v2562_v53  ;;  %v2653_v53 = vld [vmem:[#allocation7 + $0xc4] ss:$8 sps:$4 sm:$0xff]  }
  0xce   :  { %1781 = vmatpush1.bf16.msra.mxu0 %v2633_v37 }
  0xcf   :  { %813 = vmatpush1.bf16.msra.mxu1 %v2560_v55  ;;  %1782 = vmatprep.subr.bf16.mxu0 %v2638_v38  ;;  %v2651_v55 = vld [vmem:[#allocation7 + $0xc0] ss:$8 sps:$4 sm:$0xff]  }
  0xd0   :  { %814 = vmatprep.subr.bf16.mxu1 %v2565_v56  ;;  %v2654_v56 = vld [vmem:[#allocation7 + $0xd0] ss:$8 sps:$4 sm:$0xff]  }
  0xd2   :  { %1783 = vmatpush1.bf16.msra.mxu0 %v2636_v40 }
  0xd3   :  { %815 = vmatpush1.bf16.msra.mxu1 %v2563_v57  ;;  %1784 = vmatprep.subr.bf16.mxu0 %v2641_v41  ;;  %v2659_v57 = vld [vmem:[#allocation7 + $0xe4] ss:$8 sps:$4 sm:$0xff]  }
  0xd4   :  { %816 = vmatprep.subr.bf16.mxu1 %v2568_v58  ;;  %v2657_v58 = vld [vmem:[#allocation7 + $0xe0] ss:$8 sps:$4 sm:$0xff]  }
  0xd6   :  { %1785 = vmatpush1.bf16.msra.mxu0 %v2639_v45 }
  0xd7   :  { %817 = vmatpush1.bf16.msra.mxu1 %v2566_v59  ;;  %1786 = vmatprep.subr.bf16.mxu0 %v2644_v46  ;;  %v2662_v59 = vld [vmem:[#allocation7 + $0xf4] ss:$8 sps:$4 sm:$0xff]  }
  0xd8   :  { %818 = vmatprep.subr.bf16.mxu1 %v2571_v61  ;;  %v2660_v61 = vld [vmem:[#allocation7 + $0xf0] ss:$8 sps:$4 sm:$0xff]  }
  0xda   :  { %1787 = vmatpush1.bf16.msra.mxu0 %v2642_v47 }
  0xdb   :  { %819 = vmatpush1.bf16.msra.mxu1 %v2569_v62  ;;  %1788 = vmatprep.subr.bf16.mxu0 %v2647_v48  ;;  %v2665_v62 = vld [vmem:[#allocation7 + $0x104] ss:$8 sps:$4 sm:$0xff]  }
  0xdc   :  { %820 = vmatprep.subr.bf16.mxu1 %v2574_v63 }
  0xde   :  { %1789 = vmatpush1.bf16.msra.mxu0 %v2645_v49 }
  0xdf   :  { %821 = vmatpush1.bf16.msra.mxu1 %v2572_v2  ;;  %1790 = vmatprep.subr.bf16.mxu0 %v2650_v50 }
  0xe0   :  { %2290 = vmatprep.subr.msk.bf16.mxu1 %vm744_vm1, %v2287_v42 }
  0xe2   :  { %1791 = vmatpush1.bf16.msra.mxu0 %v2648_v51 }
  0xe3   :  { %823 = vmatpush1.bf16.msra.mxu1 %v752_v54  ;;  %1792 = vmatprep.subr.bf16.mxu0 %v2653_v53  ;;  %v1192_v54 = vrot.slane %v3158_v1, %v3113_v30 }
  0xe4   :  { %1145 = vmatprep.subr.bf16.mxu1 %v2579_v4 }
  0xe6   :  { %831 = vmatmul.mubr.bf16.vlgmr.msra.gmra.mrb[4].mxu1 %v3137_v20  ;;  %v2609_v20 = vld [vmem:[#allocation2 + $0x14c] ss:$16 sps:$4 sm:$0xff]   ;;  %1793 = vmatpush1.bf16.msra.mxu0 %v2651_v55 }
  0xe7   :  { %1146 = vmatpush1.bf16.msra.mxu1 %v2577_v6  ;;  %2347 = vmatprep.mubr.msk.bf16.mxu1 %vm740_vm3, %v3145_v32  ;;  %v2342_v32 = vcombine.low %v426_v25, %v426_v25  ;;  %v1196_v6 = vrot.slane %v3158_v1, %v3116_v31 }
  0xe8   :  { %1147 = vmatprep.subr.bf16.mxu1 %v2582_v7 }
  0xe9   :  { %v1099_v36 = vsel %vm744_vm1, %v2342_v32, 0 }
  0xeb   :  { %1148 = vmatpush1.bf16.msra.mxu1 %v2580_v44 }
  0xec   :  { %1149 = vmatprep.subr.bf16.mxu1 %v2585_v8 }
  0xef   :  { %1150 = vmatpush1.bf16.msra.mxu1 %v2583_v9 }
  0xf0   :  { %1151 = vmatprep.subr.bf16.mxu1 %v2588_v10 }
  0xf3   :  { %1152 = vmatpush1.bf16.msra.mxu1 %v2586_v11 }
  0xf4   :  { %1153 = vmatprep.subr.bf16.mxu1 %v2591_v43 }
  0xf7   :  { %1154 = vmatpush1.bf16.msra.mxu1 %v2589_v12 }
  0xf8   :  { %1155 = vmatprep.subr.bf16.mxu1 %v2594_v60 }
  0xfb   :  { %1156 = vmatpush1.bf16.msra.mxu1 %v2592_v13 }
  0xfc   :  { %1157 = vmatprep.subr.bf16.mxu1 %v2597_v14 }
  0xff   :  { %1158 = vmatpush1.bf16.msra.mxu1 %v2595_v15 }
 0x100   :  { %1159 = vmatprep.subr.bf16.mxu1 %v2600_v16 }
 0x103   :  { %1160 = vmatpush1.bf16.msra.mxu1 %v2598_v17 }
 0x104   :  { %1161 = vmatprep.subr.bf16.mxu1 %v2603_v0 }
 0x107   :  { %1162 = vmatpush1.bf16.msra.mxu1 %v2601_v18 }
 0x108   :  { %1163 = vmatprep.subr.bf16.mxu1 %v2606_v19 }
 0x10b   :  { %1164 = vmatpush1.bf16.msra.mxu1 %v2604_v52 }
 0x10c   :  { %1165 = vmatprep.subr.bf16.mxu1 %v2609_v20 }
 0x10f   :  { %1166 = vmatpush1.bf16.msra.mxu1 %v2607_v21 }
 0x110   :  { %1167 = vmatprep.subr.bf16.mxu1 %v2612_v23 }
 0x113   :  { %1168 = vmatpush1.bf16.msra.mxu1 %v2610_v26 }
 0x114   :  { %2346 = vmatprep.subr.msk.bf16.mxu1 %vm744_vm1, %v2343_v29 }
 0x117   :  { %1170 = vmatpush1.bf16.msra.mxu1 %v1099_v36 }
 0x11a   :  { %1178 = vmatmul.mubr.bf16.vlgmr.msra.gmra.mrb[8].mxu1 %v3142_v5  ;;  %v2656_v5 = vld [vmem:[#allocation7 + $0xd4] ss:$8 sps:$4 sm:$0xff]  }
 0x11b   :  { %1794 = vmatprep.subr.bf16.mxu0 %v2656_v5  ;;  %v2711_v5 = vld [vmem:[#allocation8] ss:$8 sps:$4 sm:$0xff]  }
 0x11c   :  { %1795 = vmatpush1.bf16.msra.mxu0 %v2654_v56  ;;  %v2713_v56 = vld [vmem:[#allocation8 + $0x4] ss:$8 sps:$4 sm:$0xff]  }
 0x11d   :  { %1796 = vmatprep.subr.bf16.mxu0 %v2659_v57  ;;  %2137 = vmatprep.subr.bf16.mxu1 %v2713_v56  ;;  %v2696_v56 = vld [vmem:[#allocation7 + $0x1b0] ss:$8 sps:$4 sm:$0xff]  }
 0x11e   :  { %2138 = vmatpush1.bf16.msra.mxu1 %v2711_v5  ;;  %v2698_v5 = vld [vmem:[#allocation7 + $0x1b4] ss:$8 sps:$4 sm:$0xff]  }
 0x120   :  { %1797 = vmatpush1.bf16.msra.mxu0 %v2657_v58  ;;  %v2716_v58 = vld [vmem:[#allocation8 + $0x14] ss:$8 sps:$4 sm:$0xff]  }
 0x121   :  { %1798 = vmatprep.subr.bf16.mxu0 %v2662_v59  ;;  %2139 = vmatprep.subr.bf16.mxu1 %v2716_v58  ;;  %v3197_v58 = vsub.s32 2, %v3051_v34 }
 0x124   :  { %1799 = vmatpush1.bf16.msra.mxu0 %v2660_v61 }
 0x125   :  { %1809 = vmatprep.subr.bf16.mxu0 %v2665_v62  ;;  %v2714_v62 = vld [vmem:[#allocation8 + $0x10] ss:$8 sps:$4 sm:$0xff]  }
 0x126   :  { %2140 = vmatpush1.bf16.msra.mxu1 %v2714_v62  ;;  %v2704_v62 = vld [vmem:[#allocation7 + $0x1d4] ss:$8 sps:$4 sm:$0xff]  }
 0x185   :  { %v791_v63 = vpop.f32.mrb[0].mxu1 }
 0x186   :  { %v793_v2 = vpop.f32.mrb[1].mxu1 }
 0x187   :  { %v795_v42 = vpop.f32.mrb[2].mxu1 }
 0x188   :  { %v796_v3 = vpop.f32.mrb[3].mxu1  ;;  %v1138_v4 = vpop.f32.mrb[0].mxu0 }
 0x189   :  { %v1139_v7 = vadd.f32 %v1138_v4, %v791_v63  ;;  %v1140_v44 = vpop.f32.mrb[1].mxu0  ;;  %v2717_v3 = vld [vmem:[#allocation8 + $0x20] ss:$8 sps:$4 sm:$0xff]   ;;  %v2720_v4 = vld [vmem:[#allocation8 + $0x30] ss:$8 sps:$4 sm:$0xff]  }
 0x18a   :  { %v1141_v8 = vadd.f32 %v1140_v44, %v793_v2  ;;  %v1142_v9 = vpop.f32.mrb[2].mxu0  ;;  %v2719_v2 = vld [vmem:[#allocation8 + $0x24] ss:$8 sps:$4 sm:$0xff]  }
 0x18b   :  { %v3164_v10 = vadd.f32 %v1192_v54, %v1139_v7  ;;  %v1143_v11 = vpop.f32.mrb[3].mxu0  ;;  %2141 = vmatprep.subr.bf16.mxu1 %v2719_v2  ;;  %v2722_v54 = vld [vmem:[#allocation8 + $0x34] ss:$8 sps:$4 sm:$0xff]  }
 0x18c   :  { %v3166_v43 = vadd.f32 %v1196_v6, %v1141_v8  ;;  %2142 = vmatpush1.bf16.msra.mxu1 %v2717_v3  ;;  %v3178_v6 = vld [vmem:[#allocation10 + $0x5] ss:$8 sm:$0xf]  ;;  %v3180_v7 = vld [vmem:[#allocation10 + $0x6] ss:$8 sm:$0xf] }
 0x18d   :  { %v1217_v12 = vsel %vm112_vm0, %v3164_v10, 0.0  ;;  %v1249_v60 = vmul.f32 %v3164_v10, %v3164_v10  ;;  %2143 = vmatprep.subr.bf16.mxu1 %v2722_v54  ;;  %v1317_v8 = vrot.slane %v3178_v6, %v3113_v30 }
 0x18e   :  { %v1218_v13 = vrot.slane %v1217_v12, 4  ;;  %v1224_v14 = vsel %vm112_vm0, %v3166_v43, 0.0  ;;  %v1250_v15 = vmul.f32 %v3166_v43, %v3166_v43 }
 0x18f   :  { %v1253_v16 = vsel %vm112_vm0, %v1249_v60, 0.0  ;;  %v1225_v17 = vrot.slane %v1224_v14, 4 }
 0x190   :  { %v1219_v0 = vadd.f32 %v1218_v13, %v1217_v12  ;;  %v1254_v18 = vrot.slane %v1253_v16, 4  ;;  %v1260_v19 = vsel %vm112_vm0, %v1250_v15, 0.0  ;;  %2144 = vmatpush1.bf16.msra.mxu1 %v2720_v4  ;;  %v1321_v12 = vrot.slane %v3178_v6, %v3116_v31  ;;  %v2702_v4 = vld [vmem:[#allocation7 + $0x1d0] ss:$8 sps:$4 sm:$0xff]  }
 0x191   :  { %v1226_v52 = vadd.f32 %v1225_v17, %v1224_v14  ;;  %v1261_v20 = vrot.slane %v1260_v19, 4  ;;  %v1342_v14 = vrot.slane %v3180_v7, %v3113_v30 }
 0x192   :  { %v1220_v21 = vrot.slane %v1219_v0, 2  ;;  %v1255_v22 = vadd.f32 %v1254_v18, %v1253_v16  ;;  %v1346_v16 = vrot.slane %v3180_v7, %v3116_v31 }
 0x193   :  { %v1227_v23 = vrot.slane %v1226_v52, 2  ;;  %v1262_v24 = vadd.f32 %v1261_v20, %v1260_v19 }
 0x194   :  { %v1221_v25 = vadd.f32 %v1220_v21, %v1219_v0  ;;  %v1256_v26 = vrot.slane %v1255_v22, 2 }
 0x195   :  { %v1228_v27 = vadd.f32 %v1227_v23, %v1226_v52  ;;  %v1263_v29 = vrot.slane %v1262_v24, 2 }
 0x196   :  { %v1222_v32 = vrot.slane %v1221_v25, 1  ;;  %v1257_v33 = vadd.f32 %v1256_v26, %v1255_v22  ;;  %v2663_v22 = vld [vmem:[#allocation7 + $0x100] ss:$8 sps:$4 sm:$0xff]  }
 0x197   :  { %v1229_v35 = vrot.slane %v1228_v27, 1  ;;  %v1264_v36 = vadd.f32 %v1263_v29, %v1262_v24  ;;  %v2671_v29 = vld [vmem:[#allocation7 + $0x124] ss:$8 sps:$4 sm:$0xff]  }
 0x198   :  { %v1223_v37 = vadd.f32 %v1222_v32, %v1221_v25  ;;  %v1258_v38 = vrot.slane %v1257_v33, 1  ;;  %v2668_v25 = vld [vmem:[#allocation7 + $0x114] ss:$8 sps:$4 sm:$0xff]   ;;  %v2669_v32 = vld [vmem:[#allocation7 + $0x120] ss:$8 sps:$4 sm:$0xff]  }
 0x199   :  { %v1230_v40 = vadd.f32 %v1229_v35, %v1228_v27  ;;  %v1265_v41 = vrot.slane %v1264_v36, 1  ;;  %v2666_v27 = vld [vmem:[#allocation7 + $0x110] ss:$8 sps:$4 sm:$0xff]  }
 0x19a   :  { %v1245_v45 = vmul.f32 0.5, %v1223_v37  ;;  %v1259_v46 = vadd.f32 %v1258_v38, %v1257_v33  ;;  %v2674_v33 = vld [vmem:[#allocation7 + $0x134] ss:$8 sps:$4 sm:$0xff]   ;;  %v2672_v35 = vld [vmem:[#allocation7 + $0x130] ss:$8 sps:$4 sm:$0xff]  }
 0x19b   :  { %v1246_v47 = vmul.f32 0.5, %v1230_v40  ;;  %v1266_v48 = vadd.f32 %v1265_v41, %v1264_v36  ;;  %v2677_v36 = vld [vmem:[#allocation7 + $0x144] ss:$8 sps:$4 sm:$0xff]   ;;  %v2675_v37 = vld [vmem:[#allocation7 + $0x140] ss:$8 sps:$4 sm:$0xff]  }
 0x19c   :  { %v1281_v49 = vmul.f32 0.5, %v1259_v46  ;;  %v1285_v50 = vmul.f32 %v1245_v45, %v1245_v45  ;;  %v1297_v44 = vsub.f32 %v3164_v10, %v1245_v45  ;;  %v2680_v38 = vld [vmem:[#allocation7 + $0x154] ss:$8 sps:$4 sm:$0xff]   ;;  %v2678_v40 = vld [vmem:[#allocation7 + $0x150] ss:$8 sps:$4 sm:$0xff]  }
 0x19d   :  { %v1282_v51 = vmul.f32 0.5, %v1266_v48  ;;  %v1286_v53 = vmul.f32 %v1246_v47, %v1246_v47  ;;  %v1298_v11 = vsub.f32 %v3166_v43, %v1246_v47  ;;  %v2683_v41 = vld [vmem:[#allocation7 + $0x164] ss:$8 sps:$4 sm:$0xff]   ;;  %v2681_v45 = vld [vmem:[#allocation7 + $0x160] ss:$8 sps:$4 sm:$0xff]  }
 0x19e   :  { %v1289_v55 = vsub.f32 %v1281_v49, %v1285_v50  ;;  %v2686_v46 = vld [vmem:[#allocation7 + $0x174] ss:$8 sps:$4 sm:$0xff]   ;;  %v2684_v47 = vld [vmem:[#allocation7 + $0x170] ss:$8 sps:$4 sm:$0xff]   ;;  %v2689_v48 = vld [vmem:[#allocation7 + $0x184] ss:$8 sps:$4 sm:$0xff]  }
 0x19f   :  { %v1290_v57 = vsub.f32 %v1282_v51, %v1286_v53  ;;  %v2687_v49 = vld [vmem:[#allocation7 + $0x180] ss:$8 sps:$4 sm:$0xff]   ;;  %v2692_v50 = vld [vmem:[#allocation7 + $0x194] ss:$8 sps:$4 sm:$0xff]   ;;  %v2690_v51 = vld [vmem:[#allocation7 + $0x190] ss:$8 sps:$4 sm:$0xff]  }
 0x1a0   :  { %v1293_v59 = vmax.f32 %v1289_v55, 0.0  ;;  %v2695_v53 = vld [vmem:[#allocation7 + $0x1a4] ss:$8 sps:$4 sm:$0xff]   ;;  %v2693_v55 = vld [vmem:[#allocation7 + $0x1a0] ss:$8 sps:$4 sm:$0xff]  }
 0x1a1   :  { %v1294_v61 = vmax.f32 %v1290_v57, 0.0  ;;  %v2701_v57 = vld [vmem:[#allocation7 + $0x1c4] ss:$8 sps:$4 sm:$0xff]  }
 0x1a2   :  { %v1301_v63 = vadd.f32 1e-05, %v1293_v59  ;;  %v3200_v59 = vsub.s32 3, %v3051_v34 }
 0x1a3   :  { %v1302_v42 = vadd.f32 1e-05, %v1294_v61  ;;  %v2699_v61 = vld [vmem:[#allocation7 + $0x1c0] ss:$8 sps:$4 sm:$0xff]  }
 0x1a4   :  { %2767 = vrsqrt.f32 %v1301_v63  ;;  %v1200_v63 = vrot.slane %v3158_v1, %v3197_v58 }
 0x1a5   :  { %2769 = vrsqrt.f32 %v1302_v42  ;;  %v1204_v42 = vrot.slane %v3158_v1, %v3200_v59 }
 0x1ae   :  { %v2768_v9 = vpop.eup %2767 }
 0x1af   :  { %v2770_v60 = vpop.eup %2769  ;;  %v1309_v13 = vmul.f32 %v2768_v9, %v1297_v44 }
 0x1b0   :  { %v1310_v15 = vmul.f32 %v2770_v60, %v1298_v11 }
 0x1b1   :  { %v1334_v10 = vmul.f32 %v1317_v8, %v1309_v13  ;;  %v2707_v8 = vld [vmem:[#allocation7 + $0x1e4] ss:$8 sps:$4 sm:$0xff]  }
 0x1b2   :  { %v1335_v17 = vmul.f32 %v1321_v12, %v1310_v15 }
 0x1b3   :  { %v1359_v0 = vadd.f32 %v1342_v14, %v1334_v10  ;;  %v2705_v14 = vld [vmem:[#allocation7 + $0x1e0] ss:$8 sps:$4 sm:$0xff]   ;;  %v2710_v10 = vld [vmem:[#allocation7 + $0x1f4] ss:$8 sps:$4 sm:$0xff]  }
 0x1b4   :  { %v1360_v18 = vadd.f32 %v1346_v16, %v1335_v17 }
 0x1b5   :  { %v1363_v19 = vmax.f32 %v1359_v0, 0.0 }
 0x1b6   :  { %v1364_v52 = vmax.f32 %v1360_v18, 0.0 }
 0x1b7   :  { %v1367_v23 = vpack.c.bf16 %v1363_v19, %v1363_v19 }
 0x1b8   :  { %v1368_v43 = vpack.c.bf16 %v1364_v52, %v1364_v52 }
 0x1b9   :  { %v3192_v20 = vpop.f32.mrb[4].mxu1 }
 0x1ba   :  { %v3194_v21 = vpop.f32.mrb[5].mxu1  ;;  %1800 = vmatprep.mubr.bf16.mxu0 %v1368_v43 }
 0x1bb   :  { %v836_v24 = vpop.f32.mrb[6].mxu1  ;;  %1801 = vmatmul.mubr.bf16.vlgmr.msra.gmra.mrb[4].mxu0 %v1367_v23 }
 0x1bc   :  { %v837_v26 = vpop.f32.mrb[7].mxu1  ;;  %1810 = vmatpush1.bf16.msra.mxu0 %v2663_v22 }
 0x1bd   :  { %1811 = vmatprep.subr.bf16.mxu0 %v2668_v25 }
 0x1c0   :  { %1812 = vmatpush1.bf16.msra.mxu0 %v2666_v27 }
 0x1c1   :  { %1813 = vmatprep.subr.bf16.mxu0 %v2671_v29 }
 0x1c4   :  { %1814 = vmatpush1.bf16.msra.mxu0 %v2669_v32 }
 0x1c5   :  { %1815 = vmatprep.subr.bf16.mxu0 %v2674_v33 }
 0x1c8   :  { %1816 = vmatpush1.bf16.msra.mxu0 %v2672_v35 }
 0x1c9   :  { %1817 = vmatprep.subr.bf16.mxu0 %v2677_v36 }
 0x1cc   :  { %1818 = vmatpush1.bf16.msra.mxu0 %v2675_v37 }
 0x1cd   :  { %1819 = vmatprep.subr.bf16.mxu0 %v2680_v38 }
 0x1d0   :  { %1820 = vmatpush1.bf16.msra.mxu0 %v2678_v40 }
 0x1d1   :  { %1821 = vmatprep.subr.bf16.mxu0 %v2683_v41 }
 0x1d4   :  { %1822 = vmatpush1.bf16.msra.mxu0 %v2681_v45 }
 0x1d5   :  { %1823 = vmatprep.subr.bf16.mxu0 %v2686_v46 }
 0x1d8   :  { %1824 = vmatpush1.bf16.msra.mxu0 %v2684_v47 }
 0x1d9   :  { %1825 = vmatprep.subr.bf16.mxu0 %v2689_v48 }
 0x1dc   :  { %1826 = vmatpush1.bf16.msra.mxu0 %v2687_v49 }
 0x1dd   :  { %1827 = vmatprep.subr.bf16.mxu0 %v2692_v50 }
 0x1e0   :  { %1828 = vmatpush1.bf16.msra.mxu0 %v2690_v51 }
 0x1e1   :  { %1829 = vmatprep.subr.bf16.mxu0 %v2695_v53 }
 0x1e4   :  { %1830 = vmatpush1.bf16.msra.mxu0 %v2693_v55 }
 0x1e5   :  { %1831 = vmatprep.subr.bf16.mxu0 %v2698_v5 }
 0x1e8   :  { %1832 = vmatpush1.bf16.msra.mxu0 %v2696_v56 }
 0x1e9   :  { %1833 = vmatprep.subr.bf16.mxu0 %v2701_v57 }
 0x1ec   :  { %1834 = vmatpush1.bf16.msra.mxu0 %v2699_v61 }
 0x1ed   :  { %v1179_v2 = vpop.f32.mrb[8].mxu1  ;;  %1835 = vmatprep.subr.bf16.mxu0 %v2704_v62 }
 0x1ee   :  { %v1180_v3 = vadd.f32 %v1179_v2, %v3192_v20  ;;  %v1181_v54 = vpop.f32.mrb[9].mxu1 }
 0x1ef   :  { %v1182_v44 = vadd.f32 %v1181_v54, %v3194_v21  ;;  %v1183_v34 = vpop.f32.mrb[10].mxu1  ;;  %v2708_v21 = vld [vmem:[#allocation7 + $0x1f0] ss:$8 sps:$4 sm:$0xff]  }
 0x1f0   :  { %v1211_v9 = vadd.f32 %v1200_v63, %v1180_v3  ;;  %v1184_v11 = vpop.f32.mrb[11].mxu1  ;;  %1836 = vmatpush1.bf16.msra.mxu0 %v2702_v4  ;;  %v1329_v4 = vrot.slane %v3178_v6, %v3200_v59 }
 0x1f1   :  { %v1212_v12 = vadd.f32 %v1204_v42, %v1182_v44  ;;  %1837 = vmatprep.subr.bf16.mxu0 %v2707_v8  ;;  %v1325_v42 = vrot.slane %v3178_v6, %v3197_v58  ;;  %v1350_v8 = vrot.slane %v3180_v7, %v3197_v58  ;;  %v2725_v6 = vld [vmem:[#allocation8 + $0x44] ss:$8 sps:$4 sm:$0xff]   ;;  %v2726_v58 = vld [vmem:[#allocation8 + $0x50] ss:$8 sps:$4 sm:$0xff]  }
 0x1f2   :  { %v1231_v60 = vsel %vm112_vm0, %v1211_v9, 0.0  ;;  %v1251_v13 = vmul.f32 %v1211_v9, %v1211_v9  ;;  %2145 = vmatprep.subr.bf16.mxu1 %v2725_v6 }
 0x1f3   :  { %v1232_v15 = vrot.slane %v1231_v60, 4  ;;  %v1238_v1 = vsel %vm112_vm0, %v1212_v12, 0.0  ;;  %v1252_v16 = vmul.f32 %v1212_v12, %v1212_v12 }
 0x1f4   :  { %v1267_v17 = vsel %vm112_vm0, %v1251_v13, 0.0  ;;  %v1239_v0 = vrot.slane %v1238_v1, 4  ;;  %1838 = vmatpush1.bf16.msra.mxu0 %v2705_v14 }
 0x1f5   :  { %v1233_v18 = vadd.f32 %v1232_v15, %v1231_v60  ;;  %v1268_v19 = vrot.slane %v1267_v17, 4  ;;  %v1274_v52 = vsel %vm112_vm0, %v1252_v16, 0.0  ;;  %1839 = vmatprep.subr.bf16.mxu0 %v2710_v10  ;;  %v1354_v60 = vrot.slane %v3180_v7, %v3200_v59  ;;  %v2729_v7 = vld [vmem:[#allocation8 + $0x60] ss:$8 sps:$4 sm:$0xff]   ;;  %v2734_v59 = vld [vmem:[#allocation8 + $0x74] ss:$8 sps:$4 sm:$0xff]  }
 0x1f6   :  { %v1240_v20 = vadd.f32 %v1239_v0, %v1238_v1  ;;  %v1275_v43 = vrot.slane %v1274_v52, 4  ;;  %v2728_v0 = vld [vmem:[#allocation8 + $0x54] ss:$8 sps:$4 sm:$0xff]  }
 0x1f7   :  { %v1234_v22 = vrot.slane %v1233_v18, 2  ;;  %v1269_v23 = vadd.f32 %v1268_v19, %v1267_v17  ;;  %v2723_v17 = vld [vmem:[#allocation8 + $0x40] ss:$8 sps:$4 sm:$0xff]   ;;  %v2732_v19 = vld [vmem:[#allocation8 + $0x70] ss:$8 sps:$4 sm:$0xff]  }
 0x1f8   :  { %v1241_v24 = vrot.slane %v1240_v20, 2  ;;  %v1276_v25 = vadd.f32 %v1275_v43, %v1274_v52  ;;  %1840 = vmatpush1.bf16.msra.mxu0 %v2708_v21  ;;  %2146 = vmatpush1.bf16.msra.mxu1 %v2723_v17  ;;  %v2737_v52 = vld [vmem:[#allocation8 + $0x84] ss:$8 sps:$4 sm:$0xff]   ;;  %v2740_v43 = vld [vmem:[#allocation8 + $0x94] ss:$8 sps:$4 sm:$0xff]  }
 0x1f9   :  { %v1235_v26 = vadd.f32 %v1234_v22, %v1233_v18  ;;  %v1270_v27 = vrot.slane %v1269_v23, 2  ;;  %2147 = vmatprep.subr.bf16.mxu1 %v2728_v0  ;;  %v2731_v18 = vld [vmem:[#allocation8 + $0x64] ss:$8 sps:$4 sm:$0xff]   ;;  %v2738_v21 = vld [vmem:[#allocation8 + $0x90] ss:$8 sps:$4 sm:$0xff]  }
 0x1fa   :  { %v1242_v29 = vadd.f32 %v1241_v24, %v1240_v20  ;;  %v1277_v32 = vrot.slane %v1276_v25, 2  ;;  %v2735_v20 = vld [vmem:[#allocation8 + $0x80] ss:$8 sps:$4 sm:$0xff]   ;;  %v2743_v22 = vld [vmem:[#allocation8 + $0xa4] ss:$8 sps:$4 sm:$0xff]  }
 0x1fb   :  { %v1236_v33 = vrot.slane %v1235_v26, 1  ;;  %v1271_v35 = vadd.f32 %v1270_v27, %v1269_v23  ;;  %v2741_v23 = vld [vmem:[#allocation8 + $0xa0] ss:$8 sps:$4 sm:$0xff]   ;;  %v2746_v24 = vld [vmem:[#allocation8 + $0xb4] ss:$8 sps:$4 sm:$0xff]  }
 0x1fc   :  { %v1243_v36 = vrot.slane %v1242_v29, 1  ;;  %v1278_v37 = vadd.f32 %v1277_v32, %v1276_v25  ;;  %2148 = vmatpush1.bf16.msra.mxu1 %v2726_v58  ;;  %v2744_v25 = vld [vmem:[#allocation8 + $0xb0] ss:$8 sps:$4 sm:$0xff]   ;;  %v2747_v27 = vld [vmem:[#allocation8 + $0xc0] ss:$8 sps:$4 sm:$0xff]  }
 0x1fd   :  { %v1237_v38 = vadd.f32 %v1236_v33, %v1235_v26  ;;  %v1272_v40 = vrot.slane %v1271_v35, 1  ;;  %2149 = vmatprep.subr.bf16.mxu1 %v2731_v18  ;;  %v2749_v26 = vld [vmem:[#allocation8 + $0xc4] ss:$8 sps:$4 sm:$0xff]   ;;  %v2752_v32 = vld [vmem:[#allocation8 + $0xd4] ss:$8 sps:$4 sm:$0xff]  }
 0x1fe   :  { %v1244_v41 = vadd.f32 %v1243_v36, %v1242_v29  ;;  %v1279_v45 = vrot.slane %v1278_v37, 1  ;;  %v2750_v29 = vld [vmem:[#allocation8 + $0xd0] ss:$8 sps:$4 sm:$0xff]   ;;  %v2755_v33 = vld [vmem:[#allocation8 + $0xe4] ss:$8 sps:$4 sm:$0xff]  }
 0x1ff   :  { %v1247_v46 = vmul.f32 0.5, %v1237_v38  ;;  %v1273_v47 = vadd.f32 %v1272_v40, %v1271_v35  ;;  %v2753_v35 = vld [vmem:[#allocation8 + $0xe0] ss:$8 sps:$4 sm:$0xff]   ;;  %v2758_v36 = vld [vmem:[#allocation8 + $0xf4] ss:$8 sps:$4 sm:$0xff]  }
 0x200   :  { %v1248_v48 = vmul.f32 0.5, %v1244_v41  ;;  %v1280_v49 = vadd.f32 %v1279_v45, %v1278_v37  ;;  %2150 = vmatpush1.bf16.msra.mxu1 %v2729_v7  ;;  %v2756_v37 = vld [vmem:[#allocation8 + $0xf0] ss:$8 sps:$4 sm:$0xff]   ;;  %v1436_v38 = vld [vmem:[#allocation10 + $0x7] ss:$8 sm:$0x3] }
 0x201   :  { %v1283_v50 = vmul.f32 0.5, %v1273_v47  ;;  %v1287_v51 = vmul.f32 %v1247_v46, %v1247_v46  ;;  %v1299_v2 = vsub.f32 %v1211_v9, %v1247_v46  ;;  %2151 = vmatprep.subr.bf16.mxu1 %v2734_v59  ;;  %v1441_v40 = vrot.slane %v1436_v38, %v3113_v30 }
 0x202   :  { %v1284_v53 = vmul.f32 0.5, %v1280_v49  ;;  %v1288_v55 = vmul.f32 %v1248_v48, %v1248_v48  ;;  %v1300_v54 = vsub.f32 %v1212_v12, %v1248_v48  ;;  %v1445_v41 = vrot.slane %v1436_v38, %v3116_v31 }
 0x203   :  { %v1291_v5 = vsub.f32 %v1283_v50, %v1287_v51 }
 0x204   :  { %v1292_v56 = vsub.f32 %v1284_v53, %v1288_v55  ;;  %2152 = vmatpush1.bf16.msra.mxu1 %v2732_v19 }
 0x205   :  { %v1295_v57 = vmax.f32 %v1291_v5, 0.0  ;;  %2153 = vmatprep.subr.bf16.mxu1 %v2737_v52 }
 0x206   :  { %v1296_v61 = vmax.f32 %v1292_v56, 0.0 }
 0x207   :  { %v1303_v62 = vadd.f32 1e-05, %v1295_v57 }
 0x208   :  { %v1304_v63 = vadd.f32 1e-05, %v1296_v61  ;;  %2154 = vmatpush1.bf16.msra.mxu1 %v2735_v20 }
 0x209   :  { %2771 = vrsqrt.f32 %v1303_v62  ;;  %2155 = vmatprep.subr.bf16.mxu1 %v2740_v43 }
 0x20a   :  { %2773 = vrsqrt.f32 %v1304_v63 }
 0x20c   :  { %2156 = vmatpush1.bf16.msra.mxu1 %v2738_v21 }
 0x20d   :  { %2157 = vmatprep.subr.bf16.mxu1 %v2743_v22 }
 0x210   :  { %2158 = vmatpush1.bf16.msra.mxu1 %v2741_v23 }
 0x211   :  { %2159 = vmatprep.subr.bf16.mxu1 %v2746_v24 }
 0x213   :  { %v2772_v3 = vpop.eup %2771 }
 0x214   :  { %v2774_v44 = vpop.eup %2773  ;;  %v1311_v34 = vmul.f32 %v2772_v3, %v1299_v2  ;;  %2160 = vmatpush1.bf16.msra.mxu1 %v2744_v25  ;;  %v1851_v25 = vld [vmem:[#allocation10 + $0x20] ss:$8 sm:$0x3] }
 0x215   :  { %v1312_v11 = vmul.f32 %v2774_v44, %v1300_v54  ;;  %2161 = vmatprep.subr.bf16.mxu1 %v2749_v26  ;;  %v1853_v26 = vld [vmem:[#allocation10 + $0x21] ss:$8 sm:$0x3] }
 0x216   :  { %v1336_v13 = vmul.f32 %v1325_v42, %v1311_v34  ;;  %v1919_v38 = vrot.slane %v1853_v26, %v3113_v30 }
 0x217   :  { %v1337_v14 = vmul.f32 %v1329_v4, %v1312_v11 }
 0x218   :  { %v1361_v9 = vadd.f32 %v1350_v8, %v1336_v13  ;;  %2162 = vmatpush1.bf16.msra.mxu1 %v2747_v27 }
 0x219   :  { %v1362_v15 = vadd.f32 %v1354_v60, %v1337_v14  ;;  %2163 = vmatprep.subr.bf16.mxu1 %v2752_v32 }
 0x21a   :  { %v1365_v1 = vmax.f32 %v1361_v9, 0.0 }
 0x21b   :  { %v1366_v16 = vmax.f32 %v1362_v15, 0.0 }
 0x21c   :  { %v1369_v12 = vpack.c.bf16 %v1365_v1, %v1365_v1  ;;  %2164 = vmatpush1.bf16.msra.mxu1 %v2750_v29  ;;  %v1906_v29 = vrot.slane %v1851_v25, %v3113_v30 }
 0x21d   :  { %v1370_v10 = vpack.c.bf16 %v1366_v16, %v1366_v16  ;;  %2165 = vmatprep.subr.bf16.mxu1 %v2755_v33 }
 0x21f   :  { %1841 = vmatprep.mubr.bf16.mxu0 %v1370_v10 }
 0x220   :  { %1842 = vmatmul.mubr.bf16.vlgmr.msra.gmra.mrb[4].mxu0 %v1369_v12  ;;  %2166 = vmatpush1.bf16.msra.mxu1 %v2753_v35  ;;  %v1910_v35 = vrot.slane %v1851_v25, %v3116_v31 }
 0x221   :  { %2167 = vmatprep.subr.bf16.mxu1 %v2758_v36 }
 0x224   :  { %2168 = vmatpush1.bf16.msra.mxu1 %v2756_v37 }
 0x2f3   :  { %v1843_v45 = vpop.f32.mrb[4].mxu0 }
 0x2f4   :  { %v2444_v46 = vadd.f32 %v1843_v45, %v1441_v40  ;;  %v1845_v47 = vpop.f32.mrb[5].mxu0 }
 0x2f5   :  { %v2445_v48 = vadd.f32 %v1845_v47, %v1445_v41  ;;  %v1847_v49 = vpop.f32.mrb[6].mxu0  ;;  %v1923_v41 = vrot.slane %v1853_v26, %v3116_v31 }
 0x2f6   :  { %v1854_v50 = vsel %vm112_vm0, %v2444_v46, 0.0  ;;  %v1870_v51 = vmul.f32 %v2444_v46, %v2444_v46  ;;  %v1848_v53 = vpop.f32.mrb[7].mxu0 }
 0x2f7   :  { %v1855_v55 = vrot.slane %v1854_v50, 4  ;;  %v1861_v5 = vsel %vm112_vm0, %v2445_v48, 0.0  ;;  %v1871_v56 = vmul.f32 %v2445_v48, %v2445_v48 }
 0x2f8   :  { %v1872_v57 = vsel %vm112_vm0, %v1870_v51, 0.0  ;;  %v1862_v61 = vrot.slane %v1861_v5, 4 }
 0x2f9   :  { %v1856_v62 = vadd.f32 %v1855_v55, %v1854_v50  ;;  %v1873_v63 = vrot.slane %v1872_v57, 4  ;;  %v1879_v2 = vsel %vm112_vm0, %v1871_v56, 0.0 }
 0x2fa   :  { %v1863_v42 = vadd.f32 %v1862_v61, %v1861_v5  ;;  %v1880_v3 = vrot.slane %v1879_v2, 4  ;;  %v1965_v5 = vld [vmem:[#allocation10 + $0x22] ss:$8 sm:$0x3] }
 0x2fb   :  { %v1857_v54 = vrot.slane %v1856_v62, 2  ;;  %v1874_v4 = vadd.f32 %v1873_v63, %v1872_v57  ;;  %v1970_v56 = vrot.slane %v1965_v5, %v3113_v30  ;;  %v1974_v61 = vrot.slane %v1965_v5, %v3116_v31 }
 0x2fc   :  { %v1864_v44 = vrot.slane %v1863_v42, 2  ;;  %v1881_v34 = vadd.f32 %v1880_v3, %v1879_v2 }
 0x2fd   :  { %v1858_v8 = vadd.f32 %v1857_v54, %v1856_v62  ;;  %v1875_v11 = vrot.slane %v1874_v4, 2 }
 0x2fe   :  { %v1865_v60 = vadd.f32 %v1864_v44, %v1863_v42  ;;  %v1882_v13 = vrot.slane %v1881_v34, 2 }
 0x2ff   :  { %v1859_v14 = vrot.slane %v1858_v8, 1  ;;  %v1876_v9 = vadd.f32 %v1875_v11, %v1874_v4 }
 0x300   :  { %v1866_v15 = vrot.slane %v1865_v60, 1  ;;  %v1883_v1 = vadd.f32 %v1882_v13, %v1881_v34 }
 0x301   :  { %v1860_v16 = vadd.f32 %v1859_v14, %v1858_v8  ;;  %v1877_v10 = vrot.slane %v1876_v9, 1 }
 0x302   :  { %v1867_v12 = vadd.f32 %v1866_v15, %v1865_v60  ;;  %v1884_v6 = vrot.slane %v1883_v1, 1 }
 0x303   :  { %v1868_v17 = vmul.f32 0.5, %v1860_v16  ;;  %v1878_v0 = vadd.f32 %v1877_v10, %v1876_v9 }
 0x304   :  { %v1869_v58 = vmul.f32 0.5, %v1867_v12  ;;  %v1885_v18 = vadd.f32 %v1884_v6, %v1883_v1 }
 0x305   :  { %v1886_v7 = vmul.f32 0.5, %v1878_v0  ;;  %v1888_v59 = vmul.f32 %v1868_v17, %v1868_v17  ;;  %v1894_v27 = vsub.f32 %v2444_v46, %v1868_v17 }
 0x306   :  { %v1887_v19 = vmul.f32 0.5, %v1885_v18  ;;  %v1889_v52 = vmul.f32 %v1869_v58, %v1869_v58  ;;  %v1895_v33 = vsub.f32 %v2445_v48, %v1869_v58  ;;  %v2179_v48 = vand.u32 127, %v105_v28 }
 0x307   :  { %v1890_v20 = vsub.f32 %v1886_v7, %v1888_v59 }
 0x308   :  { %v1891_v43 = vsub.f32 %v1887_v19, %v1889_v52  ;;  %v2180_v57 = vadd.s32 128, %v2179_v48 }
 0x309   :  { %v1892_v21 = vmax.f32 %v1890_v20, 0.0 }
 0x30a   :  { %v1893_v22 = vmax.f32 %v1891_v43, 0.0  ;;  %vm2182_vm4 = vcmp.lt.s32.totalorder %v2180_v57, 200 }
 0x30b   :  { %v1896_v23 = vadd.f32 1e-05, %v1892_v21 }
 0x30c   :  { %v1897_v24 = vadd.f32 1e-05, %v1893_v22 }
 0x30d   :  { %2775 = vrsqrt.f32 %v1896_v23 }
 0x30e   :  { %2777 = vrsqrt.f32 %v1897_v24 }
 0x317   :  { %v2776_v32 = vpop.eup %2775 }
 0x318   :  { %v2778_v36 = vpop.eup %2777  ;;  %v1900_v37 = vmul.f32 %v2776_v32, %v1894_v27 }
 0x319   :  { %v1901_v40 = vmul.f32 %v2778_v36, %v1895_v33 }
 0x31a   :  { %v1913_v45 = vmul.f32 %v1906_v29, %v1900_v37 }
 0x31b   :  { %v1914_v47 = vmul.f32 %v1910_v35, %v1901_v40 }
 0x31c   :  { %v1926_v49 = vadd.f32 %v1919_v38, %v1913_v45 }
 0x31d   :  { %v1927_v50 = vadd.f32 %v1923_v41, %v1914_v47 }
 0x31e   :  { %v1928_v51 = vmax.f32 %v1926_v49, 0.0 }
 0x31f   :  { %v1929_v53 = vmax.f32 %v1927_v50, 0.0 }
 0x320   :  { %v1930_v55 = vpack.c.bf16 %v1928_v51, %v1928_v51 }
 0x321   :  { %v1931_v46 = vpack.c.bf16 %v1929_v53, %v1929_v53 }
 0x323   :  { %2169 = vmatprep.mubr.bf16.mxu1 %v1931_v46 }
 0x324   :  { %2170 = vmatmul.mubr.bf16.vlgmr.msra.gmra.mrb[12].mxu1 %v1930_v55 }
 0x3f7   :  { %v2171_v62 = vpop.f32.mrb[12].mxu1 }
 0x3f8   :  { %v2172_v63 = vadd.f32 %v2171_v62, %v1970_v56  ;;  %v2173_v2 = vpop.f32.mrb[13].mxu1 }
 0x3f9   :  { %v2174_v42 = vadd.f32 %v2173_v2, %v1974_v61  ;;  %v2175_v3 = vpop.f32.mrb[14].mxu1 }
 0x3fa   :  { %v2176_v54 = vpop.f32.mrb[15].mxu1  ;;  %v2185_v44 = vsel %vm112_vm0, %v2172_v63, -inf }
 0x3fb   :  { %v2184_v4 = vsel %vm2182_vm4, %v2174_v42, -1e+30 }
 0x3fc   :  { %v2186_v34 = vsel %vm112_vm0, %v2184_v4, -inf }
 0x3fd   :  { %v2187_v8 = vmax.f32 %v2185_v44, %v2186_v34 }
 0x3ff   :  { %2188 = vmax.xlane.f32.xlu0 %v2187_v8 }
 0x48c   :  { %v2189_v28 = vpop.xlane.xlu0 %2188 }
 0x48d   :  { %v2190_v11 = vsub.f32 %v2172_v63, %v2189_v28  ;;  %v2191_v30 = vsub.f32 %v2184_v4, %v2189_v28 }
 0x48f   :  { %v2192_v60 = vmul.f32 1.442695, %v2190_v11  ;;  %v2194_v13 = vmul.f32 1.442695, %v2191_v30 }
 0x491   :  { %2779 = vpow2.f32 %v2192_v60 }
 0x492   :  { %2781 = vpow2.f32 %v2194_v13 }
 0x49b   :  { %v2780_v31 = vpop.eup %2779 }
 0x49c   :  { %v2782_v14 = vpop.eup %2781  ;;  %v2196_v9 = vsel %vm112_vm0, %v2780_v31, 0.0 }
 0x49d   :  { %v2197_v15 = vsel %vm112_vm0, %v2782_v14, 0.0 }
 0x49e   :  { %v2198_v1 = vadd.f32 %v2197_v15, %v2196_v9 }
 0x4a0   :  { %2199 = vadd.xlane.f32.xlu0 %v2198_v1 }
 0x52d   :  { %v2200_v16 = vpop.xlane.xlu0 %2199 }
 0x52e   :  { %2783 = vlog2.f32 %v2200_v16 }
 0x538   :  { %v2784_v10 = vpop.eup %2783 }
 0x539   :  { %v2202_v12 = vmul.f32 0.6931472, %v2784_v10 }
 0x53b   :  { %v2203_v6 = vsub.f32 %v2190_v11, %v2202_v12  ;;  %v2204_v17 = vsub.f32 %v2191_v30, %v2202_v12 }
 0x53d   :  { %v2207_v0 = vcombine.low %v2203_v6, %v2204_v17 }
 0x53f   :  { %v2214_v58 = vrot.slane %v2207_v0, %v3054_v39 }
 0x541   :  { %2218 = vst.msk [vmem:[#allocation11] sm:$0xf] %vm2217_vm6, %v2214_v58 }
 0x542   :  { %2906 = shalt.err (!%p2903_p2)
}
 0x543   :  { %s2907_s24 = scalar_lea.hbm %s3258_s7, 64 }
 0x544   :  { %p2908_p3 = scmp.ne.s32.totalorder %s3258_s7, %s2907_s24  ;;  %p2911_p4 = scmp.lt.u32.totalorder %s2907_s24, %s3258_s7 }
 0x546   :  { %p2913_p5 = pnand %p2911_p4, %p2908_p3 }
 0x548   :  { %2916 = shalt.err (!%p2913_p5)
}
 0x549   :  { %2228 = dma.vmem_to_hbm [thread:$0]  %s2226_s20, 64, %s3258_s7, [#allocation4]  }
 0x54a   :  { %2923 = dma.done.wait [#allocation4], 64  }
 0x54b   :  { %2924 = vsyncadd [#allocation4], 4294967232 }
 0x54c   :  { %2232 = vsyncpa [#allocation3], 1 }
 0x54d   :  { %2233 = vsyncpa [#allocation6], 1 }
 0x54e   :  { %2234 = vsyncpa [#allocation9], 1 }
 0x54f   :  { %2235 = vsyncpa [#allocation4], 1 }

</bundles_post_ra>
